<compile_context>
chip_gen: v5e
topology: v5e:2x2
jax: 0.10.0
libtpu: 0.0.40
codegen_flags: <defaults>
</compile_context>

<pallas_src>
import jax
import jax.numpy as jnp
from jax.experimental import pallas as pl
from jax.experimental.pallas import tpu as pltpu

OUT_LANES = 128  # lane-dense padded class dimension


def decomposable_attention_kernel(seq_ref, cmask_ref, smask_ref, w_ref, b_ref,
                                  wop_ref, out_ref):
    _, T, D = seq_ref.shape            # T = 2 * Bt * L tokens per grid block
    SB = smask_ref.shape[1] // 2       # sublane-padded per-sentence example count

    x = seq_ref[0]                     # (T, D)   compute dtype (f32 or bf16)
    cmask = cmask_ref[0]               # (T, T)   f32 cross-sentence key mask
    smask = smask_ref[0]               # (2SB, T) f32 segment/token-pad mask
    cdt = x.dtype

    # ---- packed weights: static, tile-aligned slices ---------------------------------
    wf1 = w_ref[0 * D:1 * D, :]
    wf2 = w_ref[1 * D:2 * D, :]
    wg1a = w_ref[2 * D:3 * D, :]
    wg1b = w_ref[3 * D:4 * D, :]
    wg2 = w_ref[4 * D:5 * D, :]
    wh1a = w_ref[5 * D:6 * D, :]
    wh1b = w_ref[6 * D:7 * D, :]
    wh2 = w_ref[7 * D:8 * D, :]
    bias = b_ref[...]                  # (8, D) f32, rows 0..5 used
    bf1, bf2 = bias[0:1, :], bias[1:2, :]
    bg1, bg2 = bias[2:3, :], bias[3:4, :]
    bh1, bh2 = bias[4:5, :], bias[5:6, :]
    wo = wop_ref[0:D, :]               # (D, 128) f32, cols >= C are zero
    bo = wop_ref[D:D + 1, :]           # (1, 128) f32

    def dotf(a, wt):                   # MXU matmul, f32 accumulation
        return jnp.dot(a.astype(wt.dtype), wt, preferred_element_type=jnp.float32)

    def relu(v):
        return jnp.maximum(v, 0.0)

    # ---- F (attend MLP): every token of the whole block in ONE matmul chain ----------
    f = relu(dotf(relu(dotf(x, wf1) + bf1), wf2) + bf2)            # (T, D) f32
    f = f.astype(cdt)

    # ---- block-diagonal cross-sentence attention: 2 matmuls for the whole block ------
    att = jnp.einsum('qd,kd->qk', f, f,
                     preferred_element_type=jnp.float32)           # (T, T)
    masked = jnp.where(cmask > 0.0, att, jnp.float32(-1e9))
    mx = jnp.max(masked, axis=-1, keepdims=True)
    e = jnp.exp(masked - mx) * cmask                               # off-block weights == 0
    denom = jnp.maximum(jnp.sum(e, axis=-1, keepdims=True), 1e-30)  # fully-masked guard
    wgt = e * pl.reciprocal(denom, approx=True)
    aligned = jnp.dot(wgt.astype(cdt), x,
                      preferred_element_type=jnp.float32)          # (T, D) f32

    # ---- G (compare): split-weight K=32 dots (no lane concat), whole block at once ---
    g1 = relu(dotf(x, wg1a) + dotf(aligned, wg1b) + bg1)
    g = relu(dotf(g1, wg2) + bg2)                                  # (T, D) f32

    # masked per-example token sums: ONE matmul against the segment-mask matrix
    sums = jnp.dot(smask, g, preferred_element_type=jnp.float32)   # (2SB, D)
    sum_p = sums[0:SB, :]
    sum_h = sums[SB:2 * SB, :]

    # ---- H (aggregate): split-weight dots, f32 output head ---------------------------
    h1 = relu(dotf(sum_p, wh1a) + dotf(sum_h, wh1b) + bh1)
    h2 = relu(dotf(h1, wh2) + bh2)
    out_ref[0] = jnp.dot(h2, wo, preferred_element_type=jnp.float32) + bo   # (SB, 128)


def decomposable_attention(prem_emb, hypo_emb, prem_mask, hypo_mask, params,
                           *, num_blocks=1, compute_dtype=jnp.float32):
    """prem_emb/hypo_emb: (B, L, D); masks: (B, 1, L); returns (B, C) f32 scores.

    num_blocks=1 -> single grid step (best on single-TC v5e/v6e).
    num_blocks=2 -> two "parallel" grid steps so both v7x TensorCores get work.
    """
    B, L, D = prem_emb.shape
    C = params["wo"].shape[1]
    cdt = compute_dtype

    if num_blocks < 1 or B % num_blocks != 0:
        num_blocks = 1
    nb = num_blocks
    Bt = B // nb
    T = 2 * Bt * L
    SB = ((Bt + 7) // 8) * 8           # sublane-pad the per-sentence example rows

    # ---- token slab: per block, [premise tokens of Bt examples ; hypo tokens] --------
    prem_b = prem_emb.reshape(nb, Bt * L, D)
    hypo_b = hypo_emb.reshape(nb, Bt * L, D)
    seqs = jnp.concatenate([prem_b, hypo_b], axis=1).astype(cdt)            # (nb, T, D)

    pm = prem_mask.reshape(nb, Bt, L).astype(jnp.float32)
    hm = hypo_mask.reshape(nb, Bt, L).astype(jnp.float32)
    pk = pm.reshape(nb, Bt * L)        # premise key-pad mask, flattened per block
    hk = hm.reshape(nb, Bt * L)        # hypothesis key-pad mask

    # ---- cross-attention key mask (same example, opposite sentence, unpadded key) ----
    blk = jnp.kron(jnp.eye(Bt, dtype=jnp.float32),
                   jnp.ones((L, L), jnp.float32))                           # (BtL, BtL)
    ph = blk[None] * hk[:, None, :]    # premise queries -> hypo keys
    hp = blk[None] * pk[:, None, :]    # hypo queries    -> premise keys
    zero_q = jnp.zeros_like(ph)
    cross_mask = jnp.concatenate(
        [jnp.concatenate([zero_q, ph], axis=2),
         jnp.concatenate([hp, zero_q], axis=2)], axis=1)                    # (nb, T, T)

    # ---- segment-mask matrix for masked token sums ------------------------------------
    ex_ids = jnp.repeat(jnp.arange(Bt), L)                                  # (BtL,)
    row_sel = (jnp.arange(SB)[:, None] == ex_ids[None, :]).astype(jnp.float32)  # (SB,BtL)
    seg_p = row_sel[None] * pk[:, None, :]
    seg_h = row_sel[None] * hk[:, None, :]
    zero_s = jnp.zeros((nb, SB, Bt * L), jnp.float32)
    seg_mask = jnp.concatenate(
        [jnp.concatenate([seg_p, zero_s], axis=2),
         jnp.concatenate([zero_s, seg_h], axis=2)], axis=1)                 # (nb, 2SB, T)

    # ---- packed weights (16 tensors -> 3 arrays; output head + biases stay f32) -------
    w_pack = jnp.concatenate(
        [params["wf1"], params["wf2"],
         params["wg1a"], params["wg1b"], params["wg2"],
         params["wh1a"], params["wh1b"], params["wh2"]], axis=0).astype(cdt)  # (8D, D)
    b_pack = jnp.concatenate(
        [params["bf1"], params["bf2"], params["bg1"], params["bg2"],
         params["bh1"], params["bh2"],
         jnp.zeros((2, D), jnp.float32)], axis=0)                           # (8, D) f32
    wo_pad = jnp.zeros((D, OUT_LANES), jnp.float32).at[:, :C].set(params["wo"])
    bo_pad = jnp.zeros((1, OUT_LANES), jnp.float32).at[:, :C].set(params["bo"])
    wop = jnp.concatenate(
        [wo_pad, bo_pad, jnp.zeros((7, OUT_LANES), jnp.float32)], axis=0)   # (D+8,128) f32

    out = pl.pallas_call(
        decomposable_attention_kernel,
        out_shape=jax.ShapeDtypeStruct((nb, SB, OUT_LANES), jnp.float32),
        grid_spec=pltpu.PrefetchScalarGridSpec(
            num_scalar_prefetch=0,
            grid=(nb,),
            in_specs=[
                pl.BlockSpec((1, T, D), lambda n: (n, 0, 0)),
                pl.BlockSpec((1, T, T), lambda n: (n, 0, 0)),
                pl.BlockSpec((1, 2 * SB, T), lambda n: (n, 0, 0)),
                pl.BlockSpec(w_pack.shape, lambda n: (0, 0)),
                pl.BlockSpec(b_pack.shape, lambda n: (0, 0)),
                pl.BlockSpec(wop.shape, lambda n: (0, 0)),
            ],
            out_specs=pl.BlockSpec((1, SB, OUT_LANES), lambda n: (n, 0, 0)),
        ),
        compiler_params=pltpu.CompilerParams(
            dimension_semantics=("parallel",)),   # shards grid steps across TCs on v7x
    )(seqs, cross_mask, seg_mask, w_pack, b_pack, wop)

    return out[:, :Bt, :C].reshape(B, C)


def reference_forward(prem_emb, hypo_emb, prem_mask, hypo_mask, p):
    """Pure-JAX reference of the same forward pass (for verification)."""
    def F(x):
        h = jax.nn.relu(x @ p["wf1"] + p["bf1"])
        return jax.nn.relu(h @ p["wf2"] + p["bf2"])

    fp, fh = F(prem_emb), F(hypo_emb)
    att_ji = jnp.einsum("bhd,bpd->bhp", fh, fp)
    att_ij = jnp.swapaxes(att_ji, 1, 2)

    def align(att, sent, mask):          # mask: (B, 1, Lk)
        masked = jnp.where(mask > 0, att, -1e9)
        e = jnp.exp(masked - masked.max(-1, keepdims=True)) * mask
        w = e / e.sum(-1, keepdims=True)
        return jnp.einsum("bqk,bkd->bqd", w, sent)

    aligned_hypo = align(att_ij, hypo_emb, hypo_mask)
    aligned_prem = align(att_ji, prem_emb, prem_mask)

    def G(a, b):
        h = jax.nn.relu(a @ p["wg1a"] + b @ p["wg1b"] + p["bg1"])
        return jax.nn.relu(h @ p["wg2"] + p["bg2"])

    cp = G(prem_emb, aligned_hypo) * jnp.swapaxes(prem_mask, 1, 2)
    ch = G(hypo_emb, aligned_prem) * jnp.swapaxes(hypo_mask, 1, 2)
    sp, sh = cp.sum(1), ch.sum(1)
    h1 = jax.nn.relu(sp @ p["wh1a"] + sh @ p["wh1b"] + p["bh1"])
    h2 = jax.nn.relu(h1 @ p["wh2"] + p["bh2"])
    return h2 @ p["wo"] + p["bo"]


if __name__ == "__main__":
    B, L, D, C, VOCAB = 8, 8, 32, 3, 50

    key = jax.random.PRNGKey(0)
    keys = jax.random.split(key, 20)

    # token ids with explicit trailing padding (id 0) -> masks, like utils.get_embedded_mask
    prem_ids = jax.random.randint(keys[0], (B, L), 1, VOCAB)
    hypo_ids = jax.random.randint(keys[1], (B, L), 1, VOCAB)
    prem_ids = prem_ids.at[:, L - 2:].set(0)
    hypo_ids = hypo_ids.at[:, L - 3:].set(0)
    prem_mask = (prem_ids != 0).astype(jnp.float32).reshape(B, 1, L)
    hypo_mask = (hypo_ids != 0).astype(jnp.float32).reshape(B, 1, L)

    # embedding lookup is plain-JAX glue (gather); sequences have >=1 unmasked token
    emb_table = jax.random.normal(keys[2], (VOCAB, D), jnp.float32) * 0.1
    prem_emb = emb_table[prem_ids]   # (B, L, D)
    hypo_emb = emb_table[hypo_ids]   # (B, L, D)

    def nrm(k, shape, scale=0.1):
        return jax.random.normal(k, shape, jnp.float32) * scale

    params = {
        # Attention F
        "wf1": nrm(keys[3], (D, D)),  "bf1": jnp.zeros((1, D), jnp.float32),
        "wf2": nrm(keys[4], (D, D)),  "bf2": jnp.zeros((1, D), jnp.float32),
        # Comparison G (Linear(2D,D) split into sentence/aligned halves)
        "wg1a": nrm(keys[5], (D, D)), "wg1b": nrm(keys[6], (D, D)),
        "bg1": nrm(keys[7], (1, D)),
        "wg2": nrm(keys[8], (D, D)),  "bg2": nrm(keys[9], (1, D)),
        # Aggregate H (Linear(2D,D) split into premise/hypo halves)
        "wh1a": nrm(keys[10], (D, D)), "wh1b": nrm(keys[11], (D, D)),
        "bh1": nrm(keys[12], (1, D)),
        "wh2": nrm(keys[13], (D, D)),  "bh2": nrm(keys[14], (1, D)),
        "wo": nrm(keys[15], (D, C)),   "bo": nrm(keys[16], (1, C)),
    }

    ref = reference_forward(prem_emb, hypo_emb, prem_mask, hypo_mask, params)

    # f32 path, single grid step (v5e/v6e default); approx-reciprocal softmax is the
    # only systematic deviation from the exact reference
    scores = decomposable_attention(prem_emb, hypo_emb, prem_mask, hypo_mask, params)
    scores = jax.block_until_ready(scores)
    assert scores.shape == (B, C)
    assert jnp.allclose(scores, ref, rtol=5e-3, atol=5e-3), (scores, ref)

    # 2-block "parallel" grid path (uses both v7x TensorCores; harmless elsewhere)
    scores2 = decomposable_attention(prem_emb, hypo_emb, prem_mask, hypo_mask, params,
                                     num_blocks=2)
    scores2 = jax.block_until_ready(scores2)
    assert jnp.allclose(scores2, ref, rtol=5e-3, atol=5e-3), (scores2, ref)

    # bf16 fast path (v6e/v7x MXU-native inputs, f32 accumulation, f32 output head)
    scores_bf16 = decomposable_attention(prem_emb, hypo_emb, prem_mask, hypo_mask, params,
                                         compute_dtype=jnp.bfloat16)
    scores_bf16 = jax.block_until_ready(scores_bf16)
    assert jnp.allclose(scores_bf16, ref, rtol=5e-2, atol=5e-2), (scores_bf16, ref)

    # TODO(synk): gru_encode / use_intra_attention branches disabled (settings=False);
    # a GRU encoder has no clean single-Pallas-kernel equivalent here.
    print("KERNEL_OK")
</pallas_src>

<mosaic_0001>
module attributes {stable_mosaic.version = 11 : i64} {
  func.func @decomposable_attention_kernel(%arg0: i32, %arg1: memref<1x128x32xf32, #tpu.memory_space<vmem>>, %arg2: memref<1x128x128xf32, #tpu.memory_space<vmem>>, %arg3: memref<1x16x128xf32, #tpu.memory_space<vmem>>, %arg4: memref<256x32xf32, #tpu.memory_space<vmem>>, %arg5: memref<8x32xf32, #tpu.memory_space<vmem>>, %arg6: memref<40x128xf32, #tpu.memory_space<vmem>>, %arg7: memref<1x8x128xf32, #tpu.memory_space<vmem>>) attributes {dimension_semantics = [#tpu.dimension_semantics<parallel>], iteration_bounds = array<i64: 1>, scalar_prefetch = 0 : i64, scratch_operands = 0 : i64, tpu.core_type = #tpu.core_type<tc>, window_params = [{transform_indices = @transform_0, window_bounds = array<i64: 1, 128, 32>}, {transform_indices = @transform_1, window_bounds = array<i64: 1, 128, 128>}, {transform_indices = @transform_2, window_bounds = array<i64: 1, 16, 128>}, {pipeline_mode = #tpu.pipeline_mode<synchronous>, transform_indices = @transform_3, window_bounds = array<i64: 256, 32>}, {pipeline_mode = #tpu.pipeline_mode<synchronous>, transform_indices = @transform_4, window_bounds = array<i64: 8, 32>}, {pipeline_mode = #tpu.pipeline_mode<synchronous>, transform_indices = @transform_5, window_bounds = array<i64: 40, 128>}, {transform_indices = @transform_6, window_bounds = array<i64: 1, 8, 128>}]} {
    %c0 = arith.constant 0 : index
    %c0_0 = arith.constant 0 : index
    %c0_1 = arith.constant 0 : index
    %0 = vector.load %arg1[%c0, %c0_0, %c0_1] : memref<1x128x32xf32, #tpu.memory_space<vmem>>, vector<1x128x32xf32>
    %1 = vector.shape_cast %0 : vector<1x128x32xf32> to vector<128x32xf32>
    %c0_2 = arith.constant 0 : index
    %c0_3 = arith.constant 0 : index
    %c0_4 = arith.constant 0 : index
    %2 = vector.load %arg2[%c0_2, %c0_3, %c0_4] : memref<1x128x128xf32, #tpu.memory_space<vmem>>, vector<1x128x128xf32>
    %3 = vector.shape_cast %2 : vector<1x128x128xf32> to vector<128x128xf32>
    %c0_5 = arith.constant 0 : index
    %c0_6 = arith.constant 0 : index
    %c0_7 = arith.constant 0 : index
    %4 = vector.load %arg3[%c0_5, %c0_6, %c0_7] : memref<1x16x128xf32, #tpu.memory_space<vmem>>, vector<1x16x128xf32>
    %5 = vector.shape_cast %4 : vector<1x16x128xf32> to vector<16x128xf32>
    %c0_8 = arith.constant 0 : index
    %c0_9 = arith.constant 0 : index
    %6 = vector.load %arg4[%c0_8, %c0_9] : memref<256x32xf32, #tpu.memory_space<vmem>>, vector<32x32xf32>
    %c32 = arith.constant 32 : index
    %c0_10 = arith.constant 0 : index
    %7 = vector.load %arg4[%c32, %c0_10] : memref<256x32xf32, #tpu.memory_space<vmem>>, vector<32x32xf32>
    %c64 = arith.constant 64 : index
    %c0_11 = arith.constant 0 : index
    %8 = vector.load %arg4[%c64, %c0_11] : memref<256x32xf32, #tpu.memory_space<vmem>>, vector<32x32xf32>
    %c96 = arith.constant 96 : index
    %c0_12 = arith.constant 0 : index
    %9 = vector.load %arg4[%c96, %c0_12] : memref<256x32xf32, #tpu.memory_space<vmem>>, vector<32x32xf32>
    %c128 = arith.constant 128 : index
    %c0_13 = arith.constant 0 : index
    %10 = vector.load %arg4[%c128, %c0_13] : memref<256x32xf32, #tpu.memory_space<vmem>>, vector<32x32xf32>
    %c160 = arith.constant 160 : index
    %c0_14 = arith.constant 0 : index
    %11 = vector.load %arg4[%c160, %c0_14] : memref<256x32xf32, #tpu.memory_space<vmem>>, vector<32x32xf32>
    %c192 = arith.constant 192 : index
    %c0_15 = arith.constant 0 : index
    %12 = vector.load %arg4[%c192, %c0_15] : memref<256x32xf32, #tpu.memory_space<vmem>>, vector<32x32xf32>
    %c224 = arith.constant 224 : index
    %c0_16 = arith.constant 0 : index
    %13 = vector.load %arg4[%c224, %c0_16] : memref<256x32xf32, #tpu.memory_space<vmem>>, vector<32x32xf32>
    %c0_17 = arith.constant 0 : index
    %c0_18 = arith.constant 0 : index
    %14 = vector.load %arg5[%c0_17, %c0_18] : memref<8x32xf32, #tpu.memory_space<vmem>>, vector<8x32xf32>
    %15 = vector.extract_strided_slice %14 {offsets = [0, 0], sizes = [1, 32], strides = [1, 1]} : vector<8x32xf32> to vector<1x32xf32>
    %16 = vector.extract_strided_slice %14 {offsets = [1, 0], sizes = [1, 32], strides = [1, 1]} : vector<8x32xf32> to vector<1x32xf32>
    %17 = vector.extract_strided_slice %14 {offsets = [2, 0], sizes = [1, 32], strides = [1, 1]} : vector<8x32xf32> to vector<1x32xf32>
    %18 = vector.extract_strided_slice %14 {offsets = [3, 0], sizes = [1, 32], strides = [1, 1]} : vector<8x32xf32> to vector<1x32xf32>
    %19 = vector.extract_strided_slice %14 {offsets = [4, 0], sizes = [1, 32], strides = [1, 1]} : vector<8x32xf32> to vector<1x32xf32>
    %20 = vector.extract_strided_slice %14 {offsets = [5, 0], sizes = [1, 32], strides = [1, 1]} : vector<8x32xf32> to vector<1x32xf32>
    %c0_19 = arith.constant 0 : index
    %c0_20 = arith.constant 0 : index
    %21 = vector.load %arg6[%c0_19, %c0_20] : memref<40x128xf32, #tpu.memory_space<vmem>>, vector<32x128xf32>
    %c32_21 = arith.constant 32 : index
    %c0_22 = arith.constant 0 : index
    %22 = vector.load %arg6[%c32_21, %c0_22] : memref<40x128xf32, #tpu.memory_space<vmem>>, vector<1x128xf32>
    %cst = arith.constant dense<0.000000e+00> : vector<128x32xf32>
    %23 = tpu.matmul %1, %6, %cst {dimension_numbers = #tpu.dot_dimension_numbers<[1], [0], [0], [1], [0, 0, 1, 1], [], []>} : vector<128x32xf32>, vector<32x32xf32>, vector<128x32xf32> -> vector<128x32xf32>
    %24 = vector.broadcast %15 : vector<1x32xf32> to vector<128x32xf32>
    %25 = arith.addf %23, %24 : vector<128x32xf32>
    %cst_23 = arith.constant 0.000000e+00 : f32
    %26 = vector.broadcast %cst_23 : f32 to vector<128x32xf32>
    %27 = arith.maximumf %25, %26 : vector<128x32xf32>
    %cst_24 = arith.constant dense<0.000000e+00> : vector<128x32xf32>
    %28 = tpu.matmul %27, %7, %cst_24 {dimension_numbers = #tpu.dot_dimension_numbers<[1], [0], [0], [1], [0, 0, 1, 1], [], []>} : vector<128x32xf32>, vector<32x32xf32>, vector<128x32xf32> -> vector<128x32xf32>
    %29 = vector.broadcast %16 : vector<1x32xf32> to vector<128x32xf32>
    %30 = arith.addf %28, %29 : vector<128x32xf32>
    %cst_25 = arith.constant 0.000000e+00 : f32
    %31 = vector.broadcast %cst_25 : f32 to vector<128x32xf32>
    %32 = arith.maximumf %30, %31 : vector<128x32xf32>
    "tpu.trace_start"() <{level = 10 : i32, message = "qd,kd->qk"}> : () -> ()
    %cst_26 = arith.constant dense<0.000000e+00> : vector<128x128xf32>
    %33 = tpu.matmul %32, %32, %cst_26 {dimension_numbers = #tpu.dot_dimension_numbers<[1], [1], [0], [0], [0, 0, 1, 0], [], []>} : vector<128x32xf32>, vector<128x32xf32>, vector<128x128xf32> -> vector<128x128xf32>
    %cst_27 = arith.constant 0.000000e+00 : f32
    "tpu.trace_stop"() : () -> ()
    %34 = vector.broadcast %cst_27 : f32 to vector<128x128xf32>
    %35 = arith.cmpf ogt, %3, %34 : vector<128x128xf32>
    %cst_28 = arith.constant -1.000000e+09 : f32
    %36 = vector.broadcast %cst_28 : f32 to vector<128x128xf32>
    %37 = arith.select %35, %33, %36 : vector<128x128xi1>, vector<128x128xf32>
    %cst_29 = arith.constant dense<0xFF800000> : vector<128xf32>
    %38 = vector.multi_reduction <maximumf>, %37, %cst_29 [1] : vector<128x128xf32> to vector<128xf32>
    %39 = vector.shape_cast %38 : vector<128xf32> to vector<128x1xf32>
    %40 = vector.broadcast %39 : vector<128x1xf32> to vector<128x128xf32>
    %41 = arith.subf %37, %40 : vector<128x128xf32>
    %42 = math.exp %41 : vector<128x128xf32>
    %43 = arith.mulf %42, %3 : vector<128x128xf32>
    %cst_30 = arith.constant dense<0.000000e+00> : vector<128xf32>
    %44 = vector.multi_reduction <add>, %43, %cst_30 [1] : vector<128x128xf32> to vector<128xf32>
    %45 = vector.shape_cast %44 : vector<128xf32> to vector<128x1xf32>
    %cst_31 = arith.constant 1.000000e-30 : f32
    %46 = vector.broadcast %cst_31 : f32 to vector<128x1xf32>
    %47 = arith.maximumf %45, %46 : vector<128x1xf32>
    %48 = tpu.reciprocal %47 {approx = true} : vector<128x1xf32> -> vector<128x1xf32>
    %49 = vector.broadcast %48 : vector<128x1xf32> to vector<128x128xf32>
    %50 = arith.mulf %43, %49 : vector<128x128xf32>
    %cst_32 = arith.constant dense<0.000000e+00> : vector<128x32xf32>
    %51 = tpu.matmul %50, %1, %cst_32 {dimension_numbers = #tpu.dot_dimension_numbers<[1], [0], [0], [1], [0, 0, 1, 1], [], []>} : vector<128x128xf32>, vector<128x32xf32>, vector<128x32xf32> -> vector<128x32xf32>
    %cst_33 = arith.constant dense<0.000000e+00> : vector<128x32xf32>
    %52 = tpu.matmul %1, %8, %cst_33 {dimension_numbers = #tpu.dot_dimension_numbers<[1], [0], [0], [1], [0, 0, 1, 1], [], []>} : vector<128x32xf32>, vector<32x32xf32>, vector<128x32xf32> -> vector<128x32xf32>
    %cst_34 = arith.constant dense<0.000000e+00> : vector<128x32xf32>
    %53 = tpu.matmul %51, %9, %cst_34 {dimension_numbers = #tpu.dot_dimension_numbers<[1], [0], [0], [1], [0, 0, 1, 1], [], []>} : vector<128x32xf32>, vector<32x32xf32>, vector<128x32xf32> -> vector<128x32xf32>
    %54 = arith.addf %52, %53 : vector<128x32xf32>
    %55 = vector.broadcast %17 : vector<1x32xf32> to vector<128x32xf32>
    %56 = arith.addf %54, %55 : vector<128x32xf32>
    %cst_35 = arith.constant 0.000000e+00 : f32
    %57 = vector.broadcast %cst_35 : f32 to vector<128x32xf32>
    %58 = arith.maximumf %56, %57 : vector<128x32xf32>
    %cst_36 = arith.constant dense<0.000000e+00> : vector<128x32xf32>
    %59 = tpu.matmul %58, %10, %cst_36 {dimension_numbers = #tpu.dot_dimension_numbers<[1], [0], [0], [1], [0, 0, 1, 1], [], []>} : vector<128x32xf32>, vector<32x32xf32>, vector<128x32xf32> -> vector<128x32xf32>
    %60 = vector.broadcast %18 : vector<1x32xf32> to vector<128x32xf32>
    %61 = arith.addf %59, %60 : vector<128x32xf32>
    %cst_37 = arith.constant 0.000000e+00 : f32
    %62 = vector.broadcast %cst_37 : f32 to vector<128x32xf32>
    %63 = arith.maximumf %61, %62 : vector<128x32xf32>
    %cst_38 = arith.constant dense<0.000000e+00> : vector<16x32xf32>
    %64 = tpu.matmul %5, %63, %cst_38 {dimension_numbers = #tpu.dot_dimension_numbers<[1], [0], [0], [1], [0, 0, 1, 1], [], []>} : vector<16x128xf32>, vector<128x32xf32>, vector<16x32xf32> -> vector<16x32xf32>
    %65 = vector.extract_strided_slice %64 {offsets = [0, 0], sizes = [8, 32], strides = [1, 1]} : vector<16x32xf32> to vector<8x32xf32>
    %66 = vector.extract_strided_slice %64 {offsets = [8, 0], sizes = [8, 32], strides = [1, 1]} : vector<16x32xf32> to vector<8x32xf32>
    %cst_39 = arith.constant dense<0.000000e+00> : vector<8x32xf32>
    %67 = tpu.matmul %65, %11, %cst_39 {dimension_numbers = #tpu.dot_dimension_numbers<[1], [0], [0], [1], [0, 0, 1, 1], [], []>} : vector<8x32xf32>, vector<32x32xf32>, vector<8x32xf32> -> vector<8x32xf32>
    %cst_40 = arith.constant dense<0.000000e+00> : vector<8x32xf32>
    %68 = tpu.matmul %66, %12, %cst_40 {dimension_numbers = #tpu.dot_dimension_numbers<[1], [0], [0], [1], [0, 0, 1, 1], [], []>} : vector<8x32xf32>, vector<32x32xf32>, vector<8x32xf32> -> vector<8x32xf32>
    %69 = arith.addf %67, %68 : vector<8x32xf32>
    %70 = vector.broadcast %19 : vector<1x32xf32> to vector<8x32xf32>
    %71 = arith.addf %69, %70 : vector<8x32xf32>
    %cst_41 = arith.constant 0.000000e+00 : f32
    %72 = vector.broadcast %cst_41 : f32 to vector<8x32xf32>
    %73 = arith.maximumf %71, %72 : vector<8x32xf32>
    %cst_42 = arith.constant dense<0.000000e+00> : vector<8x32xf32>
    %74 = tpu.matmul %73, %13, %cst_42 {dimension_numbers = #tpu.dot_dimension_numbers<[1], [0], [0], [1], [0, 0, 1, 1], [], []>} : vector<8x32xf32>, vector<32x32xf32>, vector<8x32xf32> -> vector<8x32xf32>
    %75 = vector.broadcast %20 : vector<1x32xf32> to vector<8x32xf32>
    %76 = arith.addf %74, %75 : vector<8x32xf32>
    %cst_43 = arith.constant 0.000000e+00 : f32
    %77 = vector.broadcast %cst_43 : f32 to vector<8x32xf32>
    %78 = arith.maximumf %76, %77 : vector<8x32xf32>
    %cst_44 = arith.constant dense<0.000000e+00> : vector<8x128xf32>
    %79 = tpu.matmul %78, %21, %cst_44 {dimension_numbers = #tpu.dot_dimension_numbers<[1], [0], [0], [1], [0, 0, 1, 1], [], []>} : vector<8x32xf32>, vector<32x128xf32>, vector<8x128xf32> -> vector<8x128xf32>
    %80 = vector.broadcast %22 : vector<1x128xf32> to vector<8x128xf32>
    %81 = arith.addf %79, %80 : vector<8x128xf32>
    %c0_45 = arith.constant 0 : index
    %c0_46 = arith.constant 0 : index
    %c0_47 = arith.constant 0 : index
    %82 = vector.load %arg7[%c0_45, %c0_46, %c0_47] : memref<1x8x128xf32, #tpu.memory_space<vmem>>, vector<1x8x128xf32>
    %83 = vector.shape_cast %82 : vector<1x8x128xf32> to vector<8x128xf32>
    %84 = vector.shape_cast %81 : vector<8x128xf32> to vector<1x8x128xf32>
    tpu.vector_store %arg7[%c0_45, %c0_46, %c0_47], %84 {strides = array<i32>} : memref<1x8x128xf32, #tpu.memory_space<vmem>>, vector<1x8x128xf32>,
    return
  }
  func.func @transform_0(%arg0: i32) -> (i32, i32, i32) {
    %c0_i32 = arith.constant 0 : i32
    %c0_i32_0 = arith.constant 0 : i32
    %c0_i32_1 = arith.constant 0 : i32
    return %arg0, %c0_i32, %c0_i32_0 : i32, i32, i32
  }
  func.func @transform_1(%arg0: i32) -> (i32, i32, i32) {
    %c0_i32 = arith.constant 0 : i32
    %c0_i32_0 = arith.constant 0 : i32
    %c0_i32_1 = arith.constant 0 : i32
    return %arg0, %c0_i32, %c0_i32_0 : i32, i32, i32
  }
  func.func @transform_2(%arg0: i32) -> (i32, i32, i32) {
    %c0_i32 = arith.constant 0 : i32
    %c0_i32_0 = arith.constant 0 : i32
    %c0_i32_1 = arith.constant 0 : i32
    return %arg0, %c0_i32, %c0_i32_0 : i32, i32, i32
  }
  func.func @transform_3(%arg0: i32) -> (i32, i32) {
    %c0_i32 = arith.constant 0 : i32
    %c0_i32_0 = arith.constant 0 : i32
    %c0_i32_1 = arith.constant 0 : i32
    return %c0_i32, %c0_i32_0 : i32, i32
  }
  func.func @transform_4(%arg0: i32) -> (i32, i32) {
    %c0_i32 = arith.constant 0 : i32
    %c0_i32_0 = arith.constant 0 : i32
    %c0_i32_1 = arith.constant 0 : i32
    return %c0_i32, %c0_i32_0 : i32, i32
  }
  func.func @transform_5(%arg0: i32) -> (i32, i32) {
    %c0_i32 = arith.constant 0 : i32
    %c0_i32_0 = arith.constant 0 : i32
    %c0_i32_1 = arith.constant 0 : i32
    return %c0_i32, %c0_i32_0 : i32, i32
  }
  func.func @transform_6(%arg0: i32) -> (i32, i32, i32) {
    %c0_i32 = arith.constant 0 : i32
    %c0_i32_0 = arith.constant 0 : i32
    %c0_i32_1 = arith.constant 0 : i32
    return %arg0, %c0_i32, %c0_i32_0 : i32, i32, i32
  }
}

</mosaic_0001>

<bundles_post_ra>
// kernel: tpu_custom_call.1
= control target key start
LH: loop header
LB: loop body
LE: loop exit
PB: predicated region body
PF: predicated region fallthrough
CT: control target
= control target key end

     0   :  { %s2074_s0 = inlined_call_operand.vmem [shape: f32[1,128,32], index: 0, kind: input, shape index: {}]   ;;  %s2075_s1 = inlined_call_operand.vmem [shape: f32[1,128,128], index: 1, kind: input, shape index: {}]   ;;  %s2076_s2 = inlined_call_operand.vmem [shape: f32[1,16,128], index: 2, kind: input, shape index: {}]   ;;  %s2077_s3 = inlined_call_operand.vmem [shape: f32[256,32], index: 3, kind: input, shape index: {}]   ;;  %s2078_s4 = inlined_call_operand.vmem [shape: f32[8,32], index: 4, kind: input, shape index: {}]   ;;  %s2079_s5 = inlined_call_operand.vmem [shape: f32[40,128], index: 5, kind: input, shape index: {}]   ;;  %s2080_s6 = inlined_call_operand.hbm [shape: f32[1,8,128], index: 6, kind: output, shape index: {}]  }
   0x1   :  { %v61_v0 = vld [vmem:[%s2077_s3 + $0x18] sm:$0xff]  ;;  %v60_v1 = vld [vmem:[%s2077_s3 + $0x10] sm:$0xff]  ;;  %v59_v2 = vld [vmem:[%s2077_s3 + $0x8] sm:$0xff] }
   0x2   :  { %158 = vmatpush.msra.mxu0 %v61_v0 }
   0x4   :  { %159 = vmatpush.msra.mxu0 %v60_v1 }
   0x5   :  { %11 = vsyncpa [#allocation3], 0  ;;  %v58_v3 = vld [vmem:[%s2077_s3] sm:$0xff]  ;;  %vm97_vm0 = vcmask 261120   ;;  %v1491_v5 = vld [vmem:[%s2074_s0 + $0x8] sm:$0xff]  ;;  %s1433_s18 = smov [#allocation2]  }
   0x6   :  { %160 = vmatpush.msra.mxu0 %v59_v2  ;;  %v1484_v4 = vld [vmem:[%s2074_s0] sm:$0xff]  ;;  %v1498_v6 = vld [vmem:[%s2074_s0 + $0x10] sm:$0xff]  ;;  %v1505_v7 = vld [vmem:[%s2074_s0 + $0x18] sm:$0xff]  ;;  %s1211_s19 = sshll.u32 %s1433_s18, 4  ;;  %s1213_s21 = sshll.u32 %s2080_s6, 4  ;;  %s1212_s19 = int_to_ptr.vmem [resolvable:$true] %s1211_s19  ;;  %s1214_s21 = int_to_ptr.hbm [resolvable:$true] %s1213_s21 }
   0x7   :  { %v1512_v8 = vld [vmem:[%s2074_s0 + $0x20] sm:$0xff]  ;;  %v1519_v9 = vld [vmem:[%s2074_s0 + $0x28] sm:$0xff]  ;;  %v1526_v10 = vld [vmem:[%s2074_s0 + $0x30] sm:$0xff] }
   0x8   :  { %161 = vmatpush.msra.mxu0 %v58_v3  ;;  %v1533_v11 = vld [vmem:[%s2074_s0 + $0x38] sm:$0xff]  ;;  %v1540_v12 = vld [vmem:[%s2074_s0 + $0x40] sm:$0xff]  ;;  %v1547_v13 = vld [vmem:[%s2074_s0 + $0x48] sm:$0xff] }
   0x9   :  { %1222 = vmatmul.msk.f32.vlgmr.msra.gmra.mxu0 %vm97_vm0, %v1484_v4  ;;  %v1554_v14 = vld [vmem:[%s2074_s0 + $0x50] sm:$0xff]  ;;  %v39_v15 = vld [vmem:[%s2074_s0 + $0x78] sm:$0xff]  ;;  %v1567_v17 = vld [vmem:[%s2074_s0 + $0x68] sm:$0xff] }
   0xa   :  { %678 = vmatpush.msra.mxu3 %v39_v15  ;;  %v38_v16 = vld [vmem:[%s2074_s0 + $0x70] sm:$0xff]  ;;  %v1572_v18 = vld [vmem:[%s2074_s0 + $0x58] sm:$0xff]  ;;  %v1578_v19 = vld [vmem:[%s2074_s0 + $0x60] sm:$0xff] }
   0xb   :  { %v65_v20 = vld [vmem:[%s2077_s3 + $0x38] sm:$0xff]  ;;  %v64_v21 = vld [vmem:[%s2077_s3 + $0x30] sm:$0xff]  ;;  %v63_v22 = vld [vmem:[%s2077_s3 + $0x28] sm:$0xff] }
   0xc   :  { %679 = vmatpush.msra.mxu3 %v38_v16  ;;  %288 = vmatpush.msra.mxu1 %v65_v20  ;;  %v62_v23 = vld [vmem:[%s2077_s3 + $0x20] sm:$0xff] }
   0xd   :  { %v1615_v24 = vld [vmem:[%s2078_s4] sm:$0xff] }
   0xe   :  { %680 = vmatpush.msra.mxu3 %v1567_v17  ;;  %289 = vmatpush.msra.mxu1 %v64_v21  ;;  %v96_v25 = vperm.slane %v1615_v24, 0 }
  0x10   :  { %681 = vmatpush.msra.mxu3 %v1578_v19  ;;  %290 = vmatpush.msra.mxu1 %v63_v22 }
  0x11   :  { %1223 = vmatmul.msk.f32.gmra.mxu0 %vm97_vm0, %v1491_v5 }
  0x12   :  { %682 = vmatpush.msra.mxu3 %v1572_v18  ;;  %291 = vmatpush.msra.mxu1 %v62_v23 }
  0x14   :  { %683 = vmatpush.msra.mxu3 %v1554_v14 }
  0x16   :  { %684 = vmatpush.msra.mxu3 %v1547_v13 }
  0x18   :  { %685 = vmatpush.msra.mxu3 %v1540_v12 }
  0x19   :  { %1224 = vmatmul.msk.f32.gmra.mxu0 %vm97_vm0, %v1498_v6 }
  0x1a   :  { %686 = vmatpush.msra.mxu3 %v1533_v11 }
  0x1c   :  { %687 = vmatpush.msra.mxu3 %v1526_v10 }
  0x1e   :  { %688 = vmatpush.msra.mxu3 %v1519_v9 }
  0x20   :  { %689 = vmatpush.msra.mxu3 %v1512_v8 }
  0x21   :  { %1225 = vmatmul.msk.f32.gmra.mxu0 %vm97_vm0, %v1505_v7 }
  0x22   :  { %690 = vmatpush.msra.mxu3 %v1505_v7 }
  0x24   :  { %691 = vmatpush.msra.mxu3 %v1498_v6 }
  0x26   :  { %692 = vmatpush.msra.mxu3 %v1491_v5 }
  0x28   :  { %693 = vmatpush.msra.mxu3 %v1484_v4 }
  0x29   :  { %1226 = vmatmul.msk.f32.gmra.mxu0 %vm97_vm0, %v1512_v8 }
  0x31   :  { %1227 = vmatmul.msk.f32.gmra.mxu0 %vm97_vm0, %v1519_v9 }
  0x39   :  { %1228 = vmatmul.msk.f32.gmra.mxu0 %vm97_vm0, %v1526_v10 }
  0x41   :  { %1229 = vmatmul.msk.f32.gmra.mxu0 %vm97_vm0, %v1533_v11 }
  0x49   :  { %1230 = vmatmul.msk.f32.gmra.mxu0 %vm97_vm0, %v1540_v12 }
  0x51   :  { %1231 = vmatmul.msk.f32.gmra.mxu0 %vm97_vm0, %v1547_v13 }
  0x59   :  { %1232 = vmatmul.msk.f32.gmra.mxu0 %vm97_vm0, %v1554_v14 }
  0x61   :  { %1233 = vmatmul.msk.f32.gmra.mxu0 %vm97_vm0, %v1572_v18 }
  0x69   :  { %1234 = vmatmul.msk.f32.gmra.mxu0 %vm97_vm0, %v1578_v19 }
  0x71   :  { %1235 = vmatmul.msk.f32.gmra.mxu0 %vm97_vm0, %v1567_v17 }
  0x79   :  { %1236 = vmatmul.msk.f32.gmra.mxu0 %vm97_vm0, %v38_v16 }
  0x81   :  { %1237 = vmatmul.msk.f32.gmra.mxu0 %vm97_vm0, %v39_v15 }
  0x86   :  { %v163_v26 = vpop.f32.mrf.mxu0 }
  0x87   :  { %v164_v27 = vadd.f32 %v163_v26, %v96_v25 }
  0x89   :  { %v211_v28 = vmax.f32 %v164_v27, 0.0 }
  0x8b   :  { %1238 = vmatmul.msk.f32.vlgmr.msra.gmra.mxu1 %vm97_vm0, %v211_v28 }
  0x8e   :  { %v166_v29 = vpop.f32.mrf.mxu0 }
  0x8f   :  { %v167_v30 = vadd.f32 %v166_v29, %v96_v25 }
  0x91   :  { %v212_v31 = vmax.f32 %v167_v30, 0.0 }
  0x93   :  { %1239 = vmatmul.msk.f32.gmra.mxu1 %vm97_vm0, %v212_v31 }
  0x96   :  { %v169_v32 = vpop.f32.mrf.mxu0 }
  0x97   :  { %v170_v33 = vadd.f32 %v169_v32, %v96_v25 }
  0x99   :  { %v213_v34 = vmax.f32 %v170_v33, 0.0 }
  0x9b   :  { %1240 = vmatmul.msk.f32.gmra.mxu1 %vm97_vm0, %v213_v34 }
  0x9e   :  { %v172_v35 = vpop.f32.mrf.mxu0 }
  0x9f   :  { %v173_v36 = vadd.f32 %v172_v35, %v96_v25 }
  0xa1   :  { %v214_v37 = vmax.f32 %v173_v36, 0.0 }
  0xa3   :  { %1241 = vmatmul.msk.f32.gmra.mxu1 %vm97_vm0, %v214_v37 }
  0xa6   :  { %v175_v38 = vpop.f32.mrf.mxu0 }
  0xa7   :  { %v176_v39 = vadd.f32 %v175_v38, %v96_v25 }
  0xa9   :  { %v215_v40 = vmax.f32 %v176_v39, 0.0 }
  0xab   :  { %1242 = vmatmul.msk.f32.gmra.mxu1 %vm97_vm0, %v215_v40 }
  0xae   :  { %v178_v41 = vpop.f32.mrf.mxu0 }
  0xaf   :  { %v179_v42 = vadd.f32 %v178_v41, %v96_v25 }
  0xb1   :  { %v216_v43 = vmax.f32 %v179_v42, 0.0 }
  0xb3   :  { %1243 = vmatmul.msk.f32.gmra.mxu1 %vm97_vm0, %v216_v43 }
  0xb6   :  { %v181_v44 = vpop.f32.mrf.mxu0 }
  0xb7   :  { %v182_v45 = vadd.f32 %v181_v44, %v96_v25 }
  0xb9   :  { %v217_v46 = vmax.f32 %v182_v45, 0.0 }
  0xbb   :  { %1244 = vmatmul.msk.f32.gmra.mxu1 %vm97_vm0, %v217_v46 }
  0xbe   :  { %v184_v47 = vpop.f32.mrf.mxu0 }
  0xbf   :  { %v185_v48 = vadd.f32 %v184_v47, %v96_v25 }
  0xc1   :  { %v218_v49 = vmax.f32 %v185_v48, 0.0 }
  0xc3   :  { %1245 = vmatmul.msk.f32.gmra.mxu1 %vm97_vm0, %v218_v49 }
  0xc6   :  { %v187_v50 = vpop.f32.mrf.mxu0 }
  0xc7   :  { %v188_v51 = vadd.f32 %v187_v50, %v96_v25 }
  0xc9   :  { %v219_v52 = vmax.f32 %v188_v51, 0.0 }
  0xcb   :  { %1246 = vmatmul.msk.f32.gmra.mxu1 %vm97_vm0, %v219_v52 }
  0xce   :  { %v190_v53 = vpop.f32.mrf.mxu0 }
  0xcf   :  { %v191_v54 = vadd.f32 %v190_v53, %v96_v25 }
  0xd1   :  { %v220_v55 = vmax.f32 %v191_v54, 0.0 }
  0xd3   :  { %1247 = vmatmul.msk.f32.gmra.mxu1 %vm97_vm0, %v220_v55 }
  0xd6   :  { %v193_v56 = vpop.f32.mrf.mxu0 }
  0xd7   :  { %v194_v57 = vadd.f32 %v193_v56, %v96_v25 }
  0xd9   :  { %v221_v58 = vmax.f32 %v194_v57, 0.0 }
  0xdb   :  { %1248 = vmatmul.msk.f32.gmra.mxu1 %vm97_vm0, %v221_v58 }
  0xde   :  { %v196_v59 = vpop.f32.mrf.mxu0 }
  0xdf   :  { %v197_v60 = vadd.f32 %v196_v59, %v96_v25 }
  0xe1   :  { %v222_v61 = vmax.f32 %v197_v60, 0.0 }
  0xe3   :  { %1249 = vmatmul.msk.f32.gmra.mxu1 %vm97_vm0, %v222_v61 }
  0xe6   :  { %v199_v62 = vpop.f32.mrf.mxu0 }
  0xe7   :  { %v200_v63 = vadd.f32 %v199_v62, %v96_v25 }
  0xe9   :  { %v223_v0 = vmax.f32 %v200_v63, 0.0 }
  0xeb   :  { %1250 = vmatmul.msk.f32.gmra.mxu1 %vm97_vm0, %v223_v0 }
  0xee   :  { %v202_v1 = vpop.f32.mrf.mxu0 }
  0xef   :  { %v203_v2 = vadd.f32 %v202_v1, %v96_v25 }
  0xf1   :  { %v224_v3 = vmax.f32 %v203_v2, 0.0 }
  0xf3   :  { %1251 = vmatmul.msk.f32.gmra.mxu1 %vm97_vm0, %v224_v3 }
  0xf6   :  { %v205_v15 = vpop.f32.mrf.mxu0 }
  0xf7   :  { %v206_v16 = vadd.f32 %v205_v15, %v96_v25 }
  0xf9   :  { %v225_v20 = vmax.f32 %v206_v16, 0.0 }
  0xfb   :  { %1252 = vmatmul.msk.f32.gmra.mxu1 %vm97_vm0, %v225_v20 }
  0xfe   :  { %v208_v21 = vpop.f32.mrf.mxu0 }
  0xff   :  { %v209_v22 = vadd.f32 %v208_v21, %v96_v25  ;;  %v227_v25 = vperm.slane %v1615_v24, 1 }
 0x101   :  { %v226_v23 = vmax.f32 %v209_v22, 0.0 }
 0x103   :  { %1253 = vmatmul.msk.f32.gmra.mxu1 %vm97_vm0, %v226_v23 }
 0x108   :  { %v293_v26 = vpop.f32.mrf.mxu1 }
 0x109   :  { %v294_v21 = vadd.f32 %v293_v26, %v227_v25  ;;  %v40_v26 = vld [vmem:[%s2075_s1] sm:$0xff] }
 0x10a   :  { %vm470_vm1 = vcmp.gt.f32.partialorder %v40_v26, 0.0 }
 0x10b   :  { %v341_v23 = vmax.f32 %v294_v21, 0.0 }
 0x110   :  { %v296_v27 = vpop.f32.mrf.mxu1 }
 0x111   :  { %v297_v16 = vadd.f32 %v296_v27, %v227_v25 }
 0x113   :  { %v342_v22 = vmax.f32 %v297_v16, 0.0 }
 0x118   :  { %v299_v28 = vpop.f32.mrf.mxu1 }
 0x119   :  { %v300_v3 = vadd.f32 %v299_v28, %v227_v25 }
 0x11b   :  { %v343_v20 = vmax.f32 %v300_v3, 0.0 }
 0x120   :  { %v302_v29 = vpop.f32.mrf.mxu1 }
 0x121   :  { %v303_v1 = vadd.f32 %v302_v29, %v227_v25  ;;  %v41_v29 = vld [vmem:[%s2075_s1 + $0x8] sm:$0xff] }
 0x122   :  { %vm471_vm2 = vcmp.gt.f32.partialorder %v41_v29, 0.0 }
 0x123   :  { %v344_v15 = vmax.f32 %v303_v1, 0.0 }
 0x128   :  { %v305_v30 = vpop.f32.mrf.mxu1 }
 0x129   :  { %v306_v63 = vadd.f32 %v305_v30, %v227_v25 }
 0x12b   :  { %v345_v2 = vmax.f32 %v306_v63, 0.0 }
 0x130   :  { %v308_v31 = vpop.f32.mrf.mxu1 }
 0x131   :  { %v309_v61 = vadd.f32 %v308_v31, %v227_v25 }
 0x133   :  { %v346_v0 = vmax.f32 %v309_v61, 0.0 }
 0x138   :  { %v311_v32 = vpop.f32.mrf.mxu1 }
 0x139   :  { %v312_v59 = vadd.f32 %v311_v32, %v227_v25  ;;  %v42_v32 = vld [vmem:[%s2075_s1 + $0x10] sm:$0xff] }
 0x13a   :  { %vm472_vm3 = vcmp.gt.f32.partialorder %v42_v32, 0.0 }
 0x13b   :  { %v347_v62 = vmax.f32 %v312_v59, 0.0  ;;  %v1725_v59 = vld [vmem:[%s2075_s1 + $0x40] sm:$0xff] }
 0x13c   :  { %vm478_vm9 = vcmp.gt.f32.partialorder %v1725_v59, 0.0 }
 0x140   :  { %v314_v33 = vpop.f32.mrf.mxu1 }
 0x141   :  { %v315_v57 = vadd.f32 %v314_v33, %v227_v25 }
 0x143   :  { %v348_v60 = vmax.f32 %v315_v57, 0.0 }
 0x148   :  { %v317_v34 = vpop.f32.mrf.mxu1 }
 0x149   :  { %v318_v55 = vadd.f32 %v317_v34, %v227_v25 }
 0x14b   :  { %v349_v58 = vmax.f32 %v318_v55, 0.0 }
 0x150   :  { %v320_v35 = vpop.f32.mrf.mxu1 }
 0x151   :  { %v321_v53 = vadd.f32 %v320_v35, %v227_v25  ;;  %v1683_v35 = vld [vmem:[%s2075_s1 + $0x18] sm:$0xff] }
 0x152   :  { %vm473_vm4 = vcmp.gt.f32.partialorder %v1683_v35, 0.0 }
 0x153   :  { %v350_v56 = vmax.f32 %v321_v53, 0.0 }
 0x158   :  { %v323_v36 = vpop.f32.mrf.mxu1 }
 0x159   :  { %v324_v51 = vadd.f32 %v323_v36, %v227_v25 }
 0x15b   :  { %v351_v54 = vmax.f32 %v324_v51, 0.0 }
 0x160   :  { %v326_v37 = vpop.f32.mrf.mxu1 }
 0x161   :  { %v327_v49 = vadd.f32 %v326_v37, %v227_v25 }
 0x163   :  { %v352_v52 = vmax.f32 %v327_v49, 0.0 }
 0x168   :  { %v329_v38 = vpop.f32.mrf.mxu1 }
 0x169   :  { %v330_v47 = vadd.f32 %v329_v38, %v227_v25  ;;  %v1689_v38 = vld [vmem:[%s2075_s1 + $0x20] sm:$0xff] }
 0x16a   :  { %vm474_vm5 = vcmp.gt.f32.partialorder %v1689_v38, 0.0 }
 0x16b   :  { %v353_v50 = vmax.f32 %v330_v47, 0.0 }
 0x170   :  { %v332_v39 = vpop.f32.mrf.mxu1 }
 0x171   :  { %v333_v45 = vadd.f32 %v332_v39, %v227_v25 }
 0x173   :  { %v354_v48 = vmax.f32 %v333_v45, 0.0 }
 0x178   :  { %v335_v40 = vpop.f32.mrf.mxu1 }
 0x179   :  { %v336_v43 = vadd.f32 %v335_v40, %v227_v25 }
 0x17b   :  { %v355_v46 = vmax.f32 %v336_v43, 0.0  ;;  %v1704_v43 = vld [vmem:[%s2075_s1 + $0x30] sm:$0xff] }
 0x17c   :  { %vm476_vm7 = vcmp.gt.f32.partialorder %v1704_v43, 0.0 }
 0x180   :  { %v338_v41 = vpop.f32.mrf.mxu1 }
 0x181   :  { %v1636_v42 = vadd.f32 %v338_v41, %v227_v25  ;;  %v1695_v25 = vld [vmem:[%s2075_s1 + $0x28] sm:$0xff] }
 0x182   :  { %vm475_vm6 = vcmp.gt.f32.partialorder %v1695_v25, 0.0 }
 0x183   :  { %v356_v44 = vmax.f32 %v1636_v42, 0.0 }
 0x185   :  { %1254 = vmatpush.xpose.msk.msra.mxu2 %vm97_vm0, %v356_v44 }
 0x189   :  { %1255 = vmatpush.xpose.msk.msra.mxu2 %vm97_vm0, %v355_v46 }
 0x18d   :  { %1256 = vmatpush.xpose.msk.msra.mxu2 %vm97_vm0, %v354_v48 }
 0x191   :  { %1257 = vmatpush.xpose.msk.msra.mxu2 %vm97_vm0, %v353_v50 }
 0x195   :  { %1258 = vmatpush.xpose.msk.msra.mxu2 %vm97_vm0, %v352_v52 }
 0x199   :  { %1259 = vmatpush.xpose.msk.msra.mxu2 %vm97_vm0, %v351_v54 }
 0x19d   :  { %1260 = vmatpush.xpose.msk.msra.mxu2 %vm97_vm0, %v350_v56 }
 0x1a1   :  { %1261 = vmatpush.xpose.msk.msra.mxu2 %vm97_vm0, %v349_v58 }
 0x1a5   :  { %1262 = vmatpush.xpose.msk.msra.mxu2 %vm97_vm0, %v348_v60 }
 0x1a9   :  { %1263 = vmatpush.xpose.msk.msra.mxu2 %vm97_vm0, %v347_v62 }
 0x1ad   :  { %1264 = vmatpush.xpose.msk.msra.mxu2 %vm97_vm0, %v346_v0 }
 0x1b1   :  { %1265 = vmatpush.xpose.msk.msra.mxu2 %vm97_vm0, %v345_v2 }
 0x1b5   :  { %1266 = vmatpush.xpose.msk.msra.mxu2 %vm97_vm0, %v344_v15 }
 0x1b9   :  { %1267 = vmatpush.xpose.msk.msra.mxu2 %vm97_vm0, %v343_v20 }
 0x1bd   :  { %1268 = vmatpush.xpose.msk.msra.mxu2 %vm97_vm0, %v342_v22 }
 0x1c1   :  { %1269 = vmatpush.xpose.msk.msra.mxu2 %vm97_vm0, %v341_v23 }
 0x1c4   :  { %1270 = vmatmul.msk.f32.vlgmr.msra.gmra.mxu2 %vm97_vm0, %v341_v23 }
 0x1cc   :  { %1271 = vmatmul.msk.f32.gmra.mxu2 %vm97_vm0, %v342_v22 }
 0x1d4   :  { %1272 = vmatmul.msk.f32.gmra.mxu2 %vm97_vm0, %v343_v20 }
 0x1dc   :  { %1273 = vmatmul.msk.f32.gmra.mxu2 %vm97_vm0, %v344_v15 }
 0x1e4   :  { %1274 = vmatmul.msk.f32.gmra.mxu2 %vm97_vm0, %v345_v2  ;;  %v1737_v2 = vld [vmem:[%s2075_s1 + $0x48] sm:$0xff] }
 0x1e5   :  { %vm479_vm10 = vcmp.gt.f32.partialorder %v1737_v2, 0.0 }
 0x1ec   :  { %1275 = vmatmul.msk.f32.gmra.mxu2 %vm97_vm0, %v346_v0 }
 0x1f4   :  { %1276 = vmatmul.msk.f32.gmra.mxu2 %vm97_vm0, %v347_v62 }
 0x1fc   :  { %1277 = vmatmul.msk.f32.gmra.mxu2 %vm97_vm0, %v348_v60 }
 0x204   :  { %1278 = vmatmul.msk.f32.gmra.mxu2 %vm97_vm0, %v349_v58 }
 0x20c   :  { %1279 = vmatmul.msk.f32.gmra.mxu2 %vm97_vm0, %v350_v56 }
 0x214   :  { %1280 = vmatmul.msk.f32.gmra.mxu2 %vm97_vm0, %v351_v54 }
 0x21c   :  { %1281 = vmatmul.msk.f32.gmra.mxu2 %vm97_vm0, %v352_v52 }
 0x224   :  { %1282 = vmatmul.msk.f32.gmra.mxu2 %vm97_vm0, %v353_v50 }
 0x22c   :  { %1283 = vmatmul.msk.f32.gmra.mxu2 %vm97_vm0, %v354_v48 }
 0x234   :  { %1284 = vmatmul.msk.f32.gmra.mxu2 %vm97_vm0, %v355_v46  ;;  %v1713_v46 = vld [vmem:[%s2075_s1 + $0x38] sm:$0xff] }
 0x235   :  { %vm477_vm8 = vcmp.gt.f32.partialorder %v1713_v46, 0.0 }
 0x23c   :  { %1285 = vmatmul.msk.f32.gmra.mxu2 %vm97_vm0, %v356_v44 }
 0x247   :  { %v422_v27 = vpop.f32.mrf.mxu2 }
 0x248   :  { %v486_v28 = vsel %vm470_vm1, %v422_v27, -1e+09 }
 0x249   :  { %502 = vmax.xlane.f32.xlu0 %v486_v28 }
 0x24f   :  { %v425_v30 = vpop.f32.mrf.mxu2 }
 0x250   :  { %v487_v31 = vsel %vm471_vm2, %v425_v30, -1e+09 }
 0x251   :  { %504 = vmax.xlane.f32.xlu0 %v487_v31 }
 0x257   :  { %v428_v33 = vpop.f32.mrf.mxu2 }
 0x258   :  { %v488_v34 = vsel %vm472_vm3, %v428_v33, -1e+09 }
 0x259   :  { %506 = vmax.xlane.f32.xlu1 %v488_v34 }
 0x25f   :  { %v431_v36 = vpop.f32.mrf.mxu2 }
 0x260   :  { %v489_v37 = vsel %vm473_vm4, %v431_v36, -1e+09 }
 0x261   :  { %508 = vmax.xlane.f32.xlu1 %v489_v37 }
 0x267   :  { %v434_v39 = vpop.f32.mrf.mxu2 }
 0x268   :  { %v490_v40 = vsel %vm474_vm5, %v434_v39, -1e+09 }
 0x269   :  { %510 = vmax.xlane.f32.xlu2 %v490_v40 }
 0x26f   :  { %v437_v41 = vpop.f32.mrf.mxu2 }
 0x270   :  { %v1698_v42 = vsel %vm475_vm6, %v437_v41, -1e+09 }
 0x271   :  { %512 = vmax.xlane.f32.xlu2 %v1698_v42 }
 0x277   :  { %v440_v44 = vpop.f32.mrf.mxu2 }
 0x278   :  { %v1707_v45 = vsel %vm476_vm7, %v440_v44, -1e+09 }
 0x279   :  { %514 = vmax.xlane.f32.xlu0 %v1707_v45 }
 0x27f   :  { %v443_v47 = vpop.f32.mrf.mxu2 }
 0x280   :  { %v1716_v48 = vsel %vm477_vm8, %v443_v47, -1e+09  ;;  %v1776_v47 = vld [vmem:[%s2075_s1 + $0x60] sm:$0xff] }
 0x281   :  { %516 = vmax.xlane.f32.xlu2 %v1716_v48  ;;  %vm482_vm13 = vcmp.gt.f32.partialorder %v1776_v47, 0.0 }
 0x287   :  { %v446_v52 = vpop.f32.mrf.mxu2 }
 0x288   :  { %v1730_v1 = vsel %vm478_vm9, %v446_v52, -1e+09 }
 0x28f   :  { %v449_v58 = vpop.f32.mrf.mxu2 }
 0x290   :  { %v1742_v23 = vsel %vm479_vm10, %v449_v58, -1e+09 }
 0x297   :  { %v452_v3 = vpop.f32.mrf.mxu2 }
 0x2bc   :  { %v503_v49 = vpop.xlane.xlu0 %502 }
 0x2bd   :  { %v534_v50 = vsub.f32 %v486_v28, %v503_v49 }
 0x2bf   :  { %v550_v51 = vmul.f32 1.442695, %v534_v50 }
 0x2c1   :  { %1340 = vpow2.f32 %v550_v51 }
 0x2c4   :  { %v505_v53 = vpop.xlane.xlu0 %504 }
 0x2c5   :  { %v535_v54 = vsub.f32 %v487_v31, %v505_v53 }
 0x2c7   :  { %v1341_v55 = vpop.eup %1340  ;;  %v552_v56 = vmul.f32 1.442695, %v535_v54  ;;  %v1790_v54 = vld [vmem:[%s2075_s1 + $0x68] sm:$0xff] }
 0x2c8   :  { %v1719_v57 = vmul.f32 %v1341_v55, %v40_v26  ;;  %v1749_v26 = vld [vmem:[%s2075_s1 + $0x50] sm:$0xff]  ;;  %vm483_vm14 = vcmp.gt.f32.partialorder %v1790_v54, 0.0 }
 0x2c9   :  { %1342 = vpow2.f32 %v552_v56  ;;  %vm480_vm11 = vcmp.gt.f32.partialorder %v1749_v26, 0.0 }
 0x2ca   :  { %598 = vadd.xlane.f32.xlu1 %v1719_v57  ;;  %v1755_v33 = vsel %vm480_vm11, %v452_v3, -1e+09  ;;  %v1817_v3 = vld [vmem:[%s2075_s1 + $0x78] sm:$0xff] }
 0x2cb   :  { %vm485_vm1 = vcmp.gt.f32.partialorder %v1817_v3, 0.0 }
 0x2cc   :  { %v507_v60 = vpop.xlane.xlu1 %506 }
 0x2cd   :  { %v536_v61 = vsub.f32 %v488_v34, %v507_v60  ;;  %v1762_v34 = vld [vmem:[%s2075_s1 + $0x58] sm:$0xff] }
 0x2ce   :  { %vm481_vm12 = vcmp.gt.f32.partialorder %v1762_v34, 0.0 }
 0x2cf   :  { %v1343_v62 = vpop.eup %1342  ;;  %v554_v63 = vmul.f32 1.442695, %v536_v61  ;;  %v1804_v61 = vld [vmem:[%s2075_s1 + $0x70] sm:$0xff] }
 0x2d0   :  { %v1728_v0 = vmul.f32 %v1343_v62, %v41_v29  ;;  %v455_v29 = vpop.f32.mrf.mxu2  ;;  %vm484_vm15 = vcmp.gt.f32.partialorder %v1804_v61, 0.0 }
 0x2d1   :  { %1344 = vpow2.f32 %v554_v63  ;;  %v1769_v44 = vsel %vm481_vm12, %v455_v29, -1e+09 }
 0x2d2   :  { %600 = vadd.xlane.f32.xlu0 %v1728_v0  ;;  %518 = vmax.xlane.f32.xlu1 %v1730_v1 }
 0x2d4   :  { %v509_v15 = vpop.xlane.xlu1 %508 }
 0x2d5   :  { %v537_v16 = vsub.f32 %v489_v37, %v509_v15 }
 0x2d7   :  { %v1345_v20 = vpop.eup %1344  ;;  %v556_v21 = vmul.f32 1.442695, %v537_v16 }
 0x2d8   :  { %v1740_v22 = vmul.f32 %v1345_v20, %v42_v32 }
 0x2d9   :  { %1346 = vpow2.f32 %v556_v21 }
 0x2da   :  { %602 = vadd.xlane.f32.xlu2 %v1740_v22  ;;  %520 = vmax.xlane.f32.xlu0 %v1742_v23 }
 0x2dc   :  { %v511_v27 = vpop.xlane.xlu2 %510 }
 0x2dd   :  { %v538_v28 = vsub.f32 %v490_v40, %v511_v27  ;;  %v458_v40 = vpop.f32.mrf.mxu2 }
 0x2de   :  { %v1783_v52 = vsel %vm482_vm13, %v458_v40, -1e+09 }
 0x2df   :  { %v1347_v30 = vpop.eup %1346  ;;  %v558_v31 = vmul.f32 1.442695, %v538_v28 }
 0x2e0   :  { %v1753_v32 = vmul.f32 %v1347_v30, %v1683_v35 }
 0x2e1   :  { %1348 = vpow2.f32 %v558_v31 }
 0x2e2   :  { %604 = vadd.xlane.f32.xlu1 %v1753_v32  ;;  %522 = vmax.xlane.f32.xlu2 %v1755_v33 }
 0x2e4   :  { %v513_v36 = vpop.xlane.xlu2 %512 }
 0x2e5   :  { %v539_v37 = vsub.f32 %v1698_v42, %v513_v36  ;;  %v461_v53 = vpop.f32.mrf.mxu2 }
 0x2e6   :  { %v1797_v60 = vsel %vm483_vm14, %v461_v53, -1e+09 }
 0x2e7   :  { %v1349_v39 = vpop.eup %1348  ;;  %v560_v35 = vmul.f32 1.442695, %v539_v37 }
 0x2e8   :  { %v1767_v41 = vmul.f32 %v1349_v39, %v1689_v38 }
 0x2e9   :  { %1350 = vpow2.f32 %v560_v35 }
 0x2ea   :  { %606 = vadd.xlane.f32.xlu0 %v1767_v41  ;;  %524 = vmax.xlane.f32.xlu1 %v1769_v44 }
 0x2ec   :  { %v515_v42 = vpop.xlane.xlu0 %514 }
 0x2ed   :  { %v540_v49 = vsub.f32 %v1707_v45, %v515_v42 }
 0x2ef   :  { %v1351_v50 = vpop.eup %1350  ;;  %v562_v38 = vmul.f32 1.442695, %v540_v49 }
 0x2f0   :  { %v1781_v51 = vmul.f32 %v1351_v50, %v1695_v25 }
 0x2f1   :  { %1352 = vpow2.f32 %v562_v38 }
 0x2f2   :  { %608 = vadd.xlane.f32.xlu2 %v1781_v51  ;;  %526 = vmax.xlane.f32.xlu0 %v1783_v52 }
 0x2f4   :  { %v517_v45 = vpop.xlane.xlu2 %516 }
 0x2f5   :  { %v541_v55 = vsub.f32 %v1716_v48, %v517_v45  ;;  %v464_v48 = vpop.f32.mrf.mxu2 }
 0x2f7   :  { %v1353_v25 = vpop.eup %1352  ;;  %v564_v56 = vmul.f32 1.442695, %v541_v55 }
 0x2f8   :  { %v1795_v58 = vmul.f32 %v1353_v25, %v1704_v43  ;;  %v1810_v43 = vsel %vm484_vm15, %v464_v48, -1e+09 }
 0x2f9   :  { %1354 = vpow2.f32 %v564_v56 }
 0x2fa   :  { %610 = vadd.xlane.f32.xlu1 %v1795_v58  ;;  %528 = vmax.xlane.f32.xlu2 %v1797_v60 }
 0x2fd   :  { %v467_v15 = vpop.f32.mrf.mxu2 }
 0x2fe   :  { %v1820_v16 = vsel %vm485_vm1, %v467_v15, -1e+09 }
 0x2ff   :  { %v1355_v62 = vpop.eup %1354 }
 0x300   :  { %v1808_v63 = vmul.f32 %v1355_v62, %v1713_v46 }
 0x302   :  { %612 = vadd.xlane.f32.xlu0 %v1808_v63  ;;  %530 = vmax.xlane.f32.xlu1 %v1810_v43 }
 0x30a   :  { %532 = vmax.xlane.f32.xlu0 %v1820_v16 }
 0x33d   :  { %v599_v46 = vpop.xlane.xlu1 %598 }
 0x33e   :  { %v630_v20 = vmax.f32 %v599_v46, 1e-30 }
 0x340   :  { %1356 = vrcp.f32 %v630_v20 }
 0x345   :  { %v601_v21 = vpop.xlane.xlu0 %600  ;;  %v519_v27 = vpop.xlane.xlu1 %518 }
 0x346   :  { %v1357_v28 = vpop.eup %1356  ;;  %v631_v29 = vmax.f32 %v601_v21, 1e-30  ;;  %v542_v30 = vsub.f32 %v1730_v1, %v519_v27 }
 0x347   :  { %v662_v31 = vmul.f32 %v1357_v28, %v1719_v57 }
 0x348   :  { %1358 = vrcp.f32 %v631_v29  ;;  %v566_v36 = vmul.f32 1.442695, %v542_v30 }
 0x349   :  { %694 = vmatmul.f32.vlgmr.msra.gmra.mxu3 %v662_v31 }
 0x34a   :  { %1360 = vpow2.f32 %v566_v36 }
 0x34d   :  { %v603_v37 = vpop.xlane.xlu2 %602  ;;  %v521_v39 = vpop.xlane.xlu0 %520 }
 0x34e   :  { %v1359_v35 = vpop.eup %1358  ;;  %v632_v40 = vmax.f32 %v603_v37, 1e-30  ;;  %v543_v42 = vsub.f32 %v1742_v23, %v521_v39 }
 0x34f   :  { %v663_v49 = vmul.f32 %v1359_v35, %v1728_v0 }
 0x350   :  { %v1361_v50 = vpop.eup %1360  ;;  %1362 = vrcp.f32 %v632_v40  ;;  %v568_v38 = vmul.f32 1.442695, %v543_v42 }
 0x351   :  { %697 = vmatmul.f32.gmra.mxu3 %v663_v49  ;;  %v1828_v1 = vmul.f32 %v1361_v50, %v1725_v59 }
 0x352   :  { %1364 = vpow2.f32 %v568_v38 }
 0x353   :  { %614 = vadd.xlane.f32.xlu2 %v1828_v1 }
 0x355   :  { %v605_v57 = vpop.xlane.xlu1 %604  ;;  %v523_v53 = vpop.xlane.xlu2 %522 }
 0x356   :  { %v1363_v45 = vpop.eup %1362  ;;  %v633_v55 = vmax.f32 %v605_v57, 1e-30  ;;  %v544_v25 = vsub.f32 %v1755_v33, %v523_v53 }
 0x357   :  { %v664_v23 = vmul.f32 %v1363_v45, %v1740_v22 }
 0x358   :  { %v1365_v56 = vpop.eup %1364  ;;  %1366 = vrcp.f32 %v633_v55  ;;  %v570_v0 = vmul.f32 1.442695, %v544_v25 }
 0x359   :  { %700 = vmatmul.f32.gmra.mxu3 %v664_v23  ;;  %v1834_v48 = vmul.f32 %v1365_v56, %v1737_v2 }
 0x35a   :  { %1368 = vpow2.f32 %v570_v0 }
 0x35b   :  { %616 = vadd.xlane.f32.xlu1 %v1834_v48 }
 0x35d   :  { %v607_v59 = vpop.xlane.xlu0 %606  ;;  %v525_v62 = vpop.xlane.xlu1 %524 }
 0x35e   :  { %v1367_v15 = vpop.eup %1366  ;;  %v634_v46 = vmax.f32 %v607_v59, 1e-30  ;;  %v545_v20 = vsub.f32 %v1769_v44, %v525_v62 }
 0x35f   :  { %v665_v33 = vmul.f32 %v1367_v15, %v1753_v32 }
 0x360   :  { %v1369_v21 = vpop.eup %1368  ;;  %1370 = vrcp.f32 %v634_v46  ;;  %v572_v22 = vmul.f32 1.442695, %v545_v20  ;;  %v70_v20 = vld [vmem:[%s2077_s3 + $0x60] sm:$0xff] }
 0x361   :  { %703 = vmatmul.f32.gmra.mxu3 %v665_v33  ;;  %v1840_v27 = vmul.f32 %v1369_v21, %v1749_v26  ;;  %v73_v26 = vld [vmem:[%s2077_s3 + $0x78] sm:$0xff]  ;;  %v66_v33 = vld [vmem:[%s2077_s3 + $0x40] sm:$0xff] }
 0x362   :  { %1372 = vpow2.f32 %v572_v22  ;;  %803 = vmatpush.msrb.mxu0 %v73_v26 }
 0x363   :  { %618 = vadd.xlane.f32.xlu2 %v1840_v27 }
 0x365   :  { %v609_v2 = vpop.xlane.xlu2 %608  ;;  %v527_v28 = vpop.xlane.xlu0 %526 }
 0x366   :  { %v1371_v29 = vpop.eup %1370  ;;  %v635_v30 = vmax.f32 %v609_v2, 1e-30  ;;  %v546_v31 = vsub.f32 %v1783_v52, %v527_v28  ;;  %v69_v52 = vld [vmem:[%s2077_s3 + $0x58] sm:$0xff] }
 0x367   :  { %v666_v44 = vmul.f32 %v1371_v29, %v1767_v41  ;;  %868 = vmatpush.msrb.mxu1 %v69_v52 }
 0x368   :  { %v1373_v36 = vpop.eup %1372  ;;  %1374 = vrcp.f32 %v635_v30  ;;  %v574_v32 = vmul.f32 1.442695, %v546_v31 }
 0x369   :  { %706 = vmatmul.f32.gmra.mxu3 %v666_v44  ;;  %v1846_v37 = vmul.f32 %v1373_v36, %v1762_v34 }
 0x36a   :  { %1376 = vpow2.f32 %v574_v32 }
 0x36b   :  { %620 = vadd.xlane.f32.xlu0 %v1846_v37 }
 0x36d   :  { %v611_v41 = vpop.xlane.xlu1 %610  ;;  %v529_v39 = vpop.xlane.xlu2 %528 }
 0x36e   :  { %v1375_v35 = vpop.eup %1374  ;;  %v636_v40 = vmax.f32 %v611_v41, 1e-30  ;;  %v547_v34 = vsub.f32 %v1797_v60, %v529_v39 }
 0x36f   :  { %v667_v42 = vmul.f32 %v1375_v35, %v1781_v51 }
 0x370   :  { %v1377_v49 = vpop.eup %1376  ;;  %1378 = vrcp.f32 %v636_v40  ;;  %v576_v50 = vmul.f32 1.442695, %v547_v34 }
 0x371   :  { %709 = vmatmul.f32.gmra.mxu3 %v667_v42  ;;  %v1858_v38 = vmul.f32 %v1377_v49, %v1776_v47 }
 0x372   :  { %1380 = vpow2.f32 %v576_v50 }
 0x373   :  { %622 = vadd.xlane.f32.xlu1 %v1858_v38 }
 0x375   :  { %v613_v57 = vpop.xlane.xlu0 %612  ;;  %v531_v53 = vpop.xlane.xlu1 %530 }
 0x376   :  { %v1379_v45 = vpop.eup %1378  ;;  %v637_v55 = vmax.f32 %v613_v57, 1e-30  ;;  %v548_v25 = vsub.f32 %v1810_v43, %v531_v53 }
 0x377   :  { %v668_v60 = vmul.f32 %v1379_v45, %v1795_v58 }
 0x378   :  { %v1381_v23 = vpop.eup %1380  ;;  %1382 = vrcp.f32 %v637_v55  ;;  %v578_v51 = vmul.f32 1.442695, %v548_v25 }
 0x379   :  { %712 = vmatmul.f32.gmra.mxu3 %v668_v60  ;;  %v1864_v56 = vmul.f32 %v1381_v23, %v1790_v54  ;;  %v77_v60 = vld [vmem:[%s2077_s3 + $0x98] sm:$0xff]  ;;  %v74_v23 = vld [vmem:[%s2077_s3 + $0x80] sm:$0xff] }
 0x37a   :  { %1384 = vpow2.f32 %v578_v51  ;;  %1015 = vmatpush.msrb.mxu3 %v77_v60 }
 0x37b   :  { %624 = vadd.xlane.f32.xlu2 %v1864_v56 }
 0x37d   :  { %v533_v47 = vpop.xlane.xlu0 %532 }
 0x37e   :  { %v1383_v0 = vpop.eup %1382  ;;  %v549_v59 = vsub.f32 %v1820_v16, %v533_v47  ;;  %v72_v16 = vld [vmem:[%s2077_s3 + $0x70] sm:$0xff]  ;;  %v1960_v47 = vperm.slane %v1615_v24, 2 }
 0x37f   :  { %v669_v62 = vmul.f32 %v1383_v0, %v1808_v63  ;;  %v68_v63 = vld [vmem:[%s2077_s3 + $0x50] sm:$0xff]  ;;  %804 = vmatpush.msrb.mxu0 %v72_v16 }
 0x380   :  { %v1385_v15 = vpop.eup %1384  ;;  %v580_v43 = vmul.f32 1.442695, %v549_v59  ;;  %869 = vmatpush.msrb.mxu1 %v68_v63 }
 0x381   :  { %715 = vmatmul.f32.gmra.mxu3 %v669_v62  ;;  %v1870_v58 = vmul.f32 %v1385_v15, %v1804_v61  ;;  %v71_v61 = vld [vmem:[%s2077_s3 + $0x68] sm:$0xff] }
 0x382   :  { %1386 = vpow2.f32 %v580_v43  ;;  %805 = vmatpush.msrb.mxu0 %v71_v61 }
 0x383   :  { %626 = vadd.xlane.f32.xlu0 %v1870_v58 }
 0x384   :  { %806 = vmatpush.msrb.mxu0 %v70_v20 }
 0x388   :  { %v1387_v54 = vpop.eup %1386 }
 0x389   :  { %v1874_v46 = vmul.f32 %v1387_v54, %v1817_v3  ;;  %v67_v3 = vld [vmem:[%s2077_s3 + $0x48] sm:$0xff] }
 0x38a   :  { %870 = vmatpush.msrb.mxu1 %v67_v3 }
 0x38b   :  { %628 = vadd.xlane.f32.xlu1 %v1874_v46 }
 0x38c   :  { %871 = vmatpush.msrb.mxu1 %v66_v33 }
 0x38d   :  { %1302 = vmatmul.msk.f32.vlgmr.msrb.gmra.mxu1 %vm97_vm0, %v1484_v4 }
 0x395   :  { %1303 = vmatmul.msk.f32.gmra.mxu1 %vm97_vm0, %v1491_v5 }
 0x39d   :  { %1304 = vmatmul.msk.f32.gmra.mxu1 %vm97_vm0, %v1498_v6 }
 0x3a5   :  { %1305 = vmatmul.msk.f32.gmra.mxu1 %vm97_vm0, %v1505_v7 }
 0x3ad   :  { %1306 = vmatmul.msk.f32.gmra.mxu1 %vm97_vm0, %v1512_v8 }
 0x3b5   :  { %1307 = vmatmul.msk.f32.gmra.mxu1 %vm97_vm0, %v1519_v9 }
 0x3bd   :  { %1308 = vmatmul.msk.f32.gmra.mxu1 %vm97_vm0, %v1526_v10 }
 0x3c5   :  { %1309 = vmatmul.msk.f32.gmra.mxu1 %vm97_vm0, %v1533_v11 }
 0x3c6   :  { %v615_v21 = vpop.xlane.xlu2 %614 }
 0x3c7   :  { %v638_v22 = vmax.f32 %v615_v21, 1e-30 }
 0x3c9   :  { %1388 = vrcp.f32 %v638_v22 }
 0x3cc   :  { %v695_v2 = vpop.f32.mrf.mxu3 }
 0x3cd   :  { %1286 = vmatmul.msk.f32.vlgmr.msrb.gmra.mxu0 %vm97_vm0, %v695_v2  ;;  %1310 = vmatmul.msk.f32.gmra.mxu1 %vm97_vm0, %v1540_v12 }
 0x3ce   :  { %v617_v28 = vpop.xlane.xlu1 %616 }
 0x3cf   :  { %v1389_v4 = vpop.eup %1388  ;;  %v639_v29 = vmax.f32 %v617_v28, 1e-30 }
 0x3d0   :  { %v670_v5 = vmul.f32 %v1389_v4, %v1828_v1 }
 0x3d1   :  { %1390 = vrcp.f32 %v639_v29 }
 0x3d2   :  { %718 = vmatmul.f32.gmra.mxu3 %v670_v5 }
 0x3d4   :  { %v698_v6 = vpop.f32.mrf.mxu3 }
 0x3d5   :  { %1287 = vmatmul.msk.f32.gmra.mxu0 %vm97_vm0, %v698_v6  ;;  %1311 = vmatmul.msk.f32.gmra.mxu1 %vm97_vm0, %v1547_v13 }
 0x3d6   :  { %v619_v7 = vpop.xlane.xlu2 %618 }
 0x3d7   :  { %v1391_v30 = vpop.eup %1390  ;;  %v640_v31 = vmax.f32 %v619_v7, 1e-30 }
 0x3d8   :  { %v671_v44 = vmul.f32 %v1391_v30, %v1834_v48 }
 0x3d9   :  { %1392 = vrcp.f32 %v640_v31 }
 0x3da   :  { %721 = vmatmul.f32.gmra.mxu3 %v671_v44 }
 0x3dc   :  { %v701_v8 = vpop.f32.mrf.mxu3 }
 0x3dd   :  { %1288 = vmatmul.msk.f32.gmra.mxu0 %vm97_vm0, %v701_v8  ;;  %1312 = vmatmul.msk.f32.gmra.mxu1 %vm97_vm0, %v1554_v14  ;;  %v1404_v14 = vld [vmem:[%s2074_s0 + $0x70] sm:$0xff] }
 0x3de   :  { %v621_v1 = vpop.xlane.xlu0 %620 }
 0x3df   :  { %v1393_v36 = vpop.eup %1392  ;;  %v641_v32 = vmax.f32 %v621_v1, 1e-30 }
 0x3e0   :  { %v672_v26 = vmul.f32 %v1393_v36, %v1840_v27 }
 0x3e1   :  { %1394 = vrcp.f32 %v641_v32 }
 0x3e2   :  { %724 = vmatmul.f32.gmra.mxu3 %v672_v26 }
 0x3e4   :  { %v704_v9 = vpop.f32.mrf.mxu3 }
 0x3e5   :  { %1289 = vmatmul.msk.f32.gmra.mxu0 %vm97_vm0, %v704_v9  ;;  %1313 = vmatmul.msk.f32.gmra.mxu1 %vm97_vm0, %v1572_v18  ;;  %v1405_v18 = vld [vmem:[%s2074_s0 + $0x78] sm:$0xff] }
 0x3e6   :  { %v623_v48 = vpop.xlane.xlu1 %622 }
 0x3e7   :  { %v1395_v52 = vpop.eup %1394  ;;  %v642_v41 = vmax.f32 %v623_v48, 1e-30 }
 0x3e8   :  { %v673_v39 = vmul.f32 %v1395_v52, %v1846_v37 }
 0x3e9   :  { %1396 = vrcp.f32 %v642_v41 }
 0x3ea   :  { %727 = vmatmul.f32.gmra.mxu3 %v673_v39 }
 0x3ec   :  { %v707_v10 = vpop.f32.mrf.mxu3 }
 0x3ed   :  { %1290 = vmatmul.msk.f32.gmra.mxu0 %vm97_vm0, %v707_v10  ;;  %1314 = vmatmul.msk.f32.gmra.mxu1 %vm97_vm0, %v1578_v19  ;;  %v75_v19 = vld [vmem:[%s2077_s3 + $0x88] sm:$0xff] }
 0x3ee   :  { %v625_v27 = vpop.xlane.xlu2 %624 }
 0x3ef   :  { %v1397_v35 = vpop.eup %1396  ;;  %v643_v40 = vmax.f32 %v625_v27, 1e-30 }
 0x3f0   :  { %v674_v34 = vmul.f32 %v1397_v35, %v1858_v38 }
 0x3f1   :  { %1398 = vrcp.f32 %v643_v40 }
 0x3f2   :  { %730 = vmatmul.f32.gmra.mxu3 %v674_v34 }
 0x3f4   :  { %v710_v11 = vpop.f32.mrf.mxu3 }
 0x3f5   :  { %1291 = vmatmul.msk.f32.gmra.mxu0 %vm97_vm0, %v710_v11  ;;  %1315 = vmatmul.msk.f32.gmra.mxu1 %vm97_vm0, %v1567_v17  ;;  %v76_v17 = vld [vmem:[%s2077_s3 + $0x90] sm:$0xff] }
 0x3f6   :  { %v627_v37 = vpop.xlane.xlu0 %626  ;;  %1016 = vmatpush.msrb.mxu3 %v76_v17 }
 0x3f7   :  { %v1399_v42 = vpop.eup %1398  ;;  %v644_v49 = vmax.f32 %v627_v37, 1e-30 }
 0x3f8   :  { %v675_v50 = vmul.f32 %v1399_v42, %v1864_v56  ;;  %1017 = vmatpush.msrb.mxu3 %v75_v19 }
 0x3f9   :  { %1400 = vrcp.f32 %v644_v49 }
 0x3fa   :  { %733 = vmatmul.f32.gmra.mxu3 %v675_v50 }
 0x3fb   :  { %1018 = vmatpush.msrb.mxu3 %v74_v23 }
 0x3fc   :  { %v713_v12 = vpop.f32.mrf.mxu3 }
 0x3fd   :  { %1292 = vmatmul.msk.f32.gmra.mxu0 %vm97_vm0, %v713_v12  ;;  %1316 = vmatmul.msk.f32.gmra.mxu1 %vm97_vm0, %v1404_v14 }
 0x3fe   :  { %v629_v38 = vpop.xlane.xlu1 %628 }
 0x3ff   :  { %v1401_v57 = vpop.eup %1400  ;;  %v645_v53 = vmax.f32 %v629_v38, 1e-30 }
 0x400   :  { %v676_v45 = vmul.f32 %v1401_v57, %v1870_v58 }
 0x401   :  { %1402 = vrcp.f32 %v645_v53 }
 0x402   :  { %736 = vmatmul.f32.gmra.mxu3 %v676_v45 }
 0x404   :  { %v716_v13 = vpop.f32.mrf.mxu3 }
 0x405   :  { %1293 = vmatmul.msk.f32.gmra.mxu0 %vm97_vm0, %v716_v13  ;;  %1317 = vmatmul.msk.f32.gmra.mxu1 %vm97_vm0, %v1405_v18 }
 0x407   :  { %v1403_v55 = vpop.eup %1402 }
 0x408   :  { %v677_v25 = vmul.f32 %v1403_v55, %v1874_v46 }
 0x40a   :  { %739 = vmatmul.f32.gmra.mxu3 %v677_v25  ;;  %v873_v51 = vpop.f32.mrf.mxu1 }
 0x412   :  { %v876_v56 = vpop.f32.mrf.mxu1 }
 0x41a   :  { %v879_v15 = vpop.f32.mrf.mxu1 }
 0x422   :  { %v882_v61 = vpop.f32.mrf.mxu1 }
 0x42a   :  { %v885_v2 = vpop.f32.mrf.mxu1 }
 0x432   :  { %v888_v30 = vpop.f32.mrf.mxu1 }
 0x43a   :  { %v891_v9 = vpop.f32.mrf.mxu1 }
 0x442   :  { %v894_v35 = vpop.f32.mrf.mxu1 }
 0x44a   :  { %v808_v0 = vpop.f32.mrf.mxu0  ;;  %v897_v50 = vpop.f32.mrf.mxu1 }
 0x44b   :  { %v874_v59 = vadd.f32 %v873_v51, %v808_v0 }
 0x44d   :  { %v922_v62 = vadd.f32 %v1960_v47, %v874_v59 }
 0x44f   :  { %v938_v43 = vmax.f32 %v922_v62, 0.0 }
 0x451   :  { %1318 = vmatmul.msk.f32.vlgmr.msrb.gmra.mxu3 %vm97_vm0, %v938_v43 }
 0x452   :  { %v811_v58 = vpop.f32.mrf.mxu0  ;;  %v900_v12 = vpop.f32.mrf.mxu1 }
 0x453   :  { %v877_v54 = vadd.f32 %v876_v56, %v811_v58 }
 0x455   :  { %v923_v46 = vadd.f32 %v1960_v47, %v877_v54  ;;  %v719_v16 = vpop.f32.mrf.mxu3 }
 0x456   :  { %1294 = vmatmul.msk.f32.gmra.mxu0 %vm97_vm0, %v719_v16 }
 0x457   :  { %v939_v63 = vmax.f32 %v923_v46, 0.0 }
 0x459   :  { %1319 = vmatmul.msk.f32.gmra.mxu3 %vm97_vm0, %v939_v63 }
 0x45a   :  { %v814_v24 = vpop.f32.mrf.mxu0  ;;  %v903_v45 = vpop.f32.mrf.mxu1 }
 0x45b   :  { %v880_v3 = vadd.f32 %v879_v15, %v814_v24 }
 0x45d   :  { %v924_v20 = vadd.f32 %v1960_v47, %v880_v3  ;;  %v722_v33 = vpop.f32.mrf.mxu3 }
 0x45e   :  { %1295 = vmatmul.msk.f32.gmra.mxu0 %vm97_vm0, %v722_v33 }
 0x45f   :  { %v940_v21 = vmax.f32 %v924_v20, 0.0 }
 0x461   :  { %1320 = vmatmul.msk.f32.gmra.mxu3 %vm97_vm0, %v940_v21 }
 0x462   :  { %v817_v22 = vpop.f32.mrf.mxu0  ;;  %v906_v60 = vpop.f32.mrf.mxu1 }
 0x463   :  { %v883_v28 = vadd.f32 %v882_v61, %v817_v22 }
 0x465   :  { %v925_v4 = vadd.f32 %v1960_v47, %v883_v28  ;;  %v725_v29 = vpop.f32.mrf.mxu3 }
 0x466   :  { %1296 = vmatmul.msk.f32.gmra.mxu0 %vm97_vm0, %v725_v29 }
 0x467   :  { %v941_v5 = vmax.f32 %v925_v4, 0.0 }
 0x469   :  { %1321 = vmatmul.msk.f32.gmra.mxu3 %vm97_vm0, %v941_v5 }
 0x46a   :  { %v820_v6 = vpop.f32.mrf.mxu0  ;;  %v909_v0 = vpop.f32.mrf.mxu1 }
 0x46b   :  { %v886_v7 = vadd.f32 %v885_v2, %v820_v6 }
 0x46d   :  { %v926_v31 = vadd.f32 %v1960_v47, %v886_v7  ;;  %v728_v44 = vpop.f32.mrf.mxu3 }
 0x46e   :  { %1297 = vmatmul.msk.f32.gmra.mxu0 %vm97_vm0, %v728_v44 }
 0x46f   :  { %v942_v8 = vmax.f32 %v926_v31, 0.0 }
 0x471   :  { %1322 = vmatmul.msk.f32.gmra.mxu3 %vm97_vm0, %v942_v8 }
 0x472   :  { %v823_v1 = vpop.f32.mrf.mxu0  ;;  %v912_v54 = vpop.f32.mrf.mxu1 }
 0x473   :  { %v889_v36 = vadd.f32 %v888_v30, %v823_v1 }
 0x475   :  { %v927_v32 = vadd.f32 %v1960_v47, %v889_v36  ;;  %v731_v26 = vpop.f32.mrf.mxu3 }
 0x476   :  { %1298 = vmatmul.msk.f32.gmra.mxu0 %vm97_vm0, %v731_v26 }
 0x477   :  { %v943_v48 = vmax.f32 %v927_v32, 0.0 }
 0x479   :  { %1323 = vmatmul.msk.f32.gmra.mxu3 %vm97_vm0, %v943_v48 }
 0x47a   :  { %v826_v52 = vpop.f32.mrf.mxu0  ;;  %v915_v3 = vpop.f32.mrf.mxu1 }
 0x47b   :  { %v892_v41 = vadd.f32 %v891_v9, %v826_v52 }
 0x47d   :  { %v928_v39 = vadd.f32 %v1960_v47, %v892_v41  ;;  %v734_v10 = vpop.f32.mrf.mxu3 }
 0x47e   :  { %1299 = vmatmul.msk.f32.gmra.mxu0 %vm97_vm0, %v734_v10 }
 0x47f   :  { %v944_v27 = vmax.f32 %v928_v39, 0.0 }
 0x481   :  { %1324 = vmatmul.msk.f32.gmra.mxu3 %vm97_vm0, %v944_v27 }
 0x482   :  { %v829_v40 = vpop.f32.mrf.mxu0  ;;  %v918_v28 = vpop.f32.mrf.mxu1 }
 0x483   :  { %v895_v34 = vadd.f32 %v894_v35, %v829_v40 }
 0x485   :  { %v929_v11 = vadd.f32 %v1960_v47, %v895_v34  ;;  %v737_v37 = vpop.f32.mrf.mxu3 }
 0x486   :  { %1300 = vmatmul.msk.f32.gmra.mxu0 %vm97_vm0, %v737_v37 }
 0x487   :  { %v945_v42 = vmax.f32 %v929_v11, 0.0 }
 0x489   :  { %1325 = vmatmul.msk.f32.gmra.mxu3 %vm97_vm0, %v945_v42 }
 0x48d   :  { %v740_v49 = vpop.f32.mrf.mxu3 }
 0x48e   :  { %1301 = vmatmul.msk.f32.gmra.mxu0 %vm97_vm0, %v740_v49 }
 0x4d3   :  { %v832_v38 = vpop.f32.mrf.mxu0 }
 0x4d4   :  { %v898_v57 = vadd.f32 %v897_v50, %v832_v38  ;;  %v1020_v6 = vpop.f32.mrf.mxu3 }
 0x4d6   :  { %v930_v53 = vadd.f32 %v1960_v47, %v898_v57 }
 0x4d8   :  { %v946_v13 = vmax.f32 %v930_v53, 0.0 }
 0x4da   :  { %1326 = vmatmul.msk.f32.gmra.mxu3 %vm97_vm0, %v946_v13 }
 0x4db   :  { %v835_v55 = vpop.f32.mrf.mxu0 }
 0x4dc   :  { %v901_v25 = vadd.f32 %v900_v12, %v835_v55  ;;  %v1023_v30 = vpop.f32.mrf.mxu3 }
 0x4de   :  { %v931_v14 = vadd.f32 %v1960_v47, %v901_v25 }
 0x4e0   :  { %v947_v18 = vmax.f32 %v931_v14, 0.0 }
 0x4e2   :  { %1327 = vmatmul.msk.f32.gmra.mxu3 %vm97_vm0, %v947_v18 }
 0x4e3   :  { %v838_v17 = vpop.f32.mrf.mxu0 }
 0x4e4   :  { %v904_v19 = vadd.f32 %v903_v45, %v838_v17  ;;  %v1026_v31 = vpop.f32.mrf.mxu3 }
 0x4e6   :  { %v932_v23 = vadd.f32 %v1960_v47, %v904_v19 }
 0x4e8   :  { %v948_v51 = vmax.f32 %v932_v23, 0.0 }
 0x4ea   :  { %1328 = vmatmul.msk.f32.gmra.mxu3 %vm97_vm0, %v948_v51 }
 0x4eb   :  { %v841_v56 = vpop.f32.mrf.mxu0 }
 0x4ec   :  { %v907_v59 = vadd.f32 %v906_v60, %v841_v56  ;;  %v1029_v44 = vpop.f32.mrf.mxu3 }
 0x4ee   :  { %v933_v62 = vadd.f32 %v1960_v47, %v907_v59 }
 0x4f0   :  { %v949_v15 = vmax.f32 %v933_v62, 0.0 }
 0x4f2   :  { %1329 = vmatmul.msk.f32.gmra.mxu3 %vm97_vm0, %v949_v15 }
 0x4f3   :  { %v844_v43 = vpop.f32.mrf.mxu0 }
 0x4f4   :  { %v910_v58 = vadd.f32 %v909_v0, %v844_v43  ;;  %v1032_v8 = vpop.f32.mrf.mxu3 }
 0x4f6   :  { %v934_v46 = vadd.f32 %v1960_v47, %v910_v58 }
 0x4f8   :  { %v950_v16 = vmax.f32 %v934_v46, 0.0 }
 0x4fa   :  { %1330 = vmatmul.msk.f32.gmra.mxu3 %vm97_vm0, %v950_v16 }
 0x4fb   :  { %v847_v63 = vpop.f32.mrf.mxu0 }
 0x4fc   :  { %v913_v61 = vadd.f32 %v912_v54, %v847_v63  ;;  %v1035_v1 = vpop.f32.mrf.mxu3  ;;  %v56_v63 = vld [vmem:[%s2076_s2] sm:$0xff] }
 0x4fe   :  { %v935_v24 = vadd.f32 %v1960_v47, %v913_v61  ;;  %v57_v61 = vld [vmem:[%s2076_s2 + $0x8] sm:$0xff] }
 0x500   :  { %v951_v20 = vmax.f32 %v935_v24, 0.0  ;;  %v85_v24 = vld [vmem:[%s2077_s3 + $0xd8] sm:$0xff] }
 0x502   :  { %1331 = vmatmul.msk.f32.gmra.mxu3 %vm97_vm0, %v951_v20  ;;  %v83_v20 = vld [vmem:[%s2077_s3 + $0xc8] sm:$0xff] }
 0x503   :  { %v850_v33 = vpop.f32.mrf.mxu0 }
 0x504   :  { %v916_v21 = vadd.f32 %v915_v3, %v850_v33  ;;  %v1038_v36 = vpop.f32.mrf.mxu3  ;;  %v84_v3 = vld [vmem:[%s2077_s3 + $0xd0] sm:$0xff]  ;;  %v82_v33 = vld [vmem:[%s2077_s3 + $0xc0] sm:$0xff] }
 0x506   :  { %v936_v22 = vadd.f32 %v1960_v47, %v916_v21  ;;  %v81_v21 = vld [vmem:[%s2077_s3 + $0xb8] sm:$0xff] }
 0x508   :  { %v952_v2 = vmax.f32 %v936_v22, 0.0  ;;  %v80_v22 = vld [vmem:[%s2077_s3 + $0xb0] sm:$0xff] }
 0x50a   :  { %1332 = vmatmul.msk.f32.gmra.mxu3 %vm97_vm0, %v952_v2  ;;  %v79_v2 = vld [vmem:[%s2077_s3 + $0xa8] sm:$0xff] }
 0x50b   :  { %v853_v4 = vpop.f32.mrf.mxu0 }
 0x50c   :  { %v919_v29 = vadd.f32 %v918_v28, %v853_v4  ;;  %v1041_v32 = vpop.f32.mrf.mxu3  ;;  %v78_v28 = vld [vmem:[%s2077_s3 + $0xa0] sm:$0xff] }
 0x50e   :  { %v937_v5 = vadd.f32 %v1960_v47, %v919_v29  ;;  %v2005_v47 = vld [vmem:[%s2078_s4] sm:$0xff] }
 0x50f   :  { %v954_v27 = vperm.slane %v2005_v47, 3 }
 0x510   :  { %v953_v7 = vmax.f32 %v937_v5, 0.0  ;;  %v89_v5 = vld [vmem:[%s2077_s3 + $0xf8] sm:$0xff] }
 0x511   :  { %v1042_v25 = vadd.f32 %v1041_v32, %v954_v27  ;;  %v1039_v18 = vadd.f32 %v1038_v36, %v954_v27  ;;  %v1036_v17 = vadd.f32 %v1035_v1, %v954_v27  ;;  %v1033_v23 = vadd.f32 %v1032_v8, %v954_v27 }
 0x512   :  { %1333 = vmatmul.msk.f32.gmra.mxu3 %vm97_vm0, %v953_v7  ;;  %v1030_v56 = vadd.f32 %v1029_v44, %v954_v27  ;;  %v1027_v59 = vadd.f32 %v1026_v31, %v954_v27  ;;  %v1024_v15 = vadd.f32 %v1023_v30, %v954_v27  ;;  %v1021_v58 = vadd.f32 %v1020_v6, %v954_v27  ;;  %v88_v6 = vld [vmem:[%s2077_s3 + $0xf0] sm:$0xff]  ;;  %v87_v7 = vld [vmem:[%s2077_s3 + $0xe8] sm:$0xff]  ;;  %v86_v30 = vld [vmem:[%s2077_s3 + $0xe0] sm:$0xff] }
 0x513   :  { %v1075_v19 = vmax.f32 %v1042_v25, 0.0  ;;  %v1074_v51 = vmax.f32 %v1039_v18, 0.0  ;;  %v1073_v0 = vmax.f32 %v1036_v17, 0.0  ;;  %v1072_v62 = vmax.f32 %v1033_v23, 0.0  ;;  %v94_v31 = vld [vmem:[%s2079_s5 + $0x18] sm:$0xff] }
 0x514   :  { %v1071_v43 = vmax.f32 %v1030_v56, 0.0  ;;  %v1070_v54 = vmax.f32 %v1027_v59, 0.0  ;;  %v1069_v46 = vmax.f32 %v1024_v15, 0.0  ;;  %v1068_v16 = vmax.f32 %v1021_v58, 0.0 }
 0x515   :  { %v1153_v8 = vperm.slane %v2005_v47, 4 }
 0x55d   :  { %v1044_v26 = vpop.f32.mrf.mxu3 }
 0x55e   :  { %v1045_v13 = vadd.f32 %v1044_v26, %v954_v27 }
 0x560   :  { %v1076_v60 = vmax.f32 %v1045_v13, 0.0 }
 0x565   :  { %v1047_v9 = vpop.f32.mrf.mxu3 }
 0x566   :  { %v1048_v53 = vadd.f32 %v1047_v9, %v954_v27  ;;  %v93_v9 = vld [vmem:[%s2079_s5 + $0x10] sm:$0xff] }
 0x568   :  { %v1077_v14 = vmax.f32 %v1048_v53, 0.0 }
 0x56d   :  { %v1050_v48 = vpop.f32.mrf.mxu3 }
 0x56e   :  { %v1051_v38 = vadd.f32 %v1050_v48, %v954_v27  ;;  %v92_v48 = vld [vmem:[%s2079_s5 + $0x8] sm:$0xff] }
 0x570   :  { %v1078_v55 = vmax.f32 %v1051_v38, 0.0 }
 0x575   :  { %v1053_v52 = vpop.f32.mrf.mxu3 }
 0x576   :  { %v1054_v50 = vadd.f32 %v1053_v52, %v954_v27  ;;  %v91_v52 = vld [vmem:[%s2079_s5] sm:$0xff] }
 0x578   :  { %v1079_v45 = vmax.f32 %v1054_v50, 0.0 }
 0x57d   :  { %v1056_v41 = vpop.f32.mrf.mxu3 }
 0x57e   :  { %v1057_v42 = vadd.f32 %v1056_v41, %v954_v27  ;;  %v1156_v41 = vperm.slane %v2005_v47, 5 }
 0x580   :  { %v1080_v57 = vmax.f32 %v1057_v42, 0.0 }
 0x585   :  { %v1059_v39 = vpop.f32.mrf.mxu3 }
 0x586   :  { %v1060_v11 = vadd.f32 %v1059_v39, %v954_v27 }
 0x588   :  { %v1081_v12 = vmax.f32 %v1060_v11, 0.0 }
 0x58d   :  { %v1062_v10 = vpop.f32.mrf.mxu3 }
 0x58e   :  { %v1063_v40 = vadd.f32 %v1062_v10, %v954_v27 }
 0x590   :  { %v1082_v49 = vmax.f32 %v1063_v40, 0.0 }
 0x595   :  { %v1065_v35 = vpop.f32.mrf.mxu3 }
 0x596   :  { %v1066_v34 = vadd.f32 %v1065_v35, %v954_v27  ;;  %v1339_v35 = vld [vmem:[%s2079_s5 + $0x20] ss:$0 sm:$0xff] }
 0x598   :  { %v1083_v37 = vmax.f32 %v1066_v34, 0.0 }
 0x59a   :  { %1084 = vmatpush.msrb.mxu2 %v1083_v37 }
 0x59c   :  { %1085 = vmatpush.msrb.mxu2 %v1082_v49 }
 0x59e   :  { %1086 = vmatpush.msrb.mxu2 %v1081_v12 }
 0x5a0   :  { %1087 = vmatpush.msrb.mxu2 %v1080_v57 }
 0x5a2   :  { %1088 = vmatpush.msrb.mxu2 %v1079_v45 }
 0x5a4   :  { %1089 = vmatpush.msrb.mxu2 %v1078_v55 }
 0x5a6   :  { %1090 = vmatpush.msrb.mxu2 %v1077_v14 }
 0x5a8   :  { %1091 = vmatpush.msrb.mxu2 %v1076_v60 }
 0x5aa   :  { %1092 = vmatpush.msrb.mxu2 %v1075_v19 }
 0x5ac   :  { %1093 = vmatpush.msrb.mxu2 %v1074_v51 }
 0x5ae   :  { %1094 = vmatpush.msrb.mxu2 %v1073_v0 }
 0x5b0   :  { %1095 = vmatpush.msrb.mxu2 %v1072_v62 }
 0x5b2   :  { %1096 = vmatpush.msrb.mxu2 %v1071_v43 }
 0x5b4   :  { %1097 = vmatpush.msrb.mxu2 %v1070_v54 }
 0x5b6   :  { %1098 = vmatpush.msrb.mxu2 %v1069_v46 }
 0x5b8   :  { %1099 = vmatpush.msrb.mxu2 %v1068_v16 }
 0x5b9   :  { %1100 = vmatmul.f32.vlgmr.msrb.gmra.mxu2 %v56_v63 }
 0x5ba   :  { %1122 = vmatpush.msra.mxu2 %v85_v24 }
 0x5bc   :  { %1123 = vmatpush.msra.mxu2 %v84_v3 }
 0x5be   :  { %1124 = vmatpush.msra.mxu2 %v83_v20 }
 0x5c0   :  { %1125 = vmatpush.msra.mxu2 %v82_v33 }
 0x5c1   :  { %1103 = vmatmul.f32.gmra.mxu2 %v57_v61 }
 0x5c2   :  { %1145 = vmatpush.msrb.mxu2 %v81_v21 }
 0x5c4   :  { %1146 = vmatpush.msrb.mxu2 %v80_v22 }
 0x5c6   :  { %1147 = vmatpush.msrb.mxu2 %v79_v2 }
 0x5c8   :  { %1148 = vmatpush.msrb.mxu2 %v78_v28 }
 0x63c   :  { %v1101_v4 = vpop.f32.mrf.mxu2 }
 0x644   :  { %v1104_v29 = vpop.f32.mrf.mxu2 }
 0x645   :  { %1334 = vmatmul.msk.f32.vlgmr.msra.gmra.mxu2 %vm97_vm0, %v1104_v29 }
 0x646   :  { %1172 = vmatpush.msra.mxu2 %v89_v5 }
 0x648   :  { %1173 = vmatpush.msra.mxu2 %v88_v6 }
 0x64a   :  { %1174 = vmatpush.msra.mxu2 %v87_v7 }
 0x64c   :  { %1175 = vmatpush.msra.mxu2 %v86_v30 }
 0x64d   :  { %1335 = vmatmul.msk.f32.vlgmr.msrb.gmra.mxu2 %vm97_vm0, %v1101_v4 }
 0x64e   :  { %1197 = vmatpush.msrb.mxu2 %v94_v31 }
 0x650   :  { %1198 = vmatpush.msrb.mxu2 %v93_v9 }
 0x652   :  { %1199 = vmatpush.msrb.mxu2 %v92_v48 }
 0x654   :  { %1200 = vmatpush.msrb.mxu2 %v91_v52 }
 0x6c8   :  { %v1127_v44 = vpop.f32.mrf.mxu2 }
 0x6d0   :  { %v1150_v1 = vpop.f32.mrf.mxu2 }
 0x6d1   :  { %v1151_v36 = vadd.f32 %v1150_v1, %v1127_v44 }
 0x6d3   :  { %v1154_v32 = vadd.f32 %v1153_v8, %v1151_v36 }
 0x6d5   :  { %v1155_v26 = vmax.f32 %v1154_v32, 0.0 }
 0x6d7   :  { %1336 = vmatmul.msk.f32.vlgmr.msra.gmra.mxu2 %vm97_vm0, %v1155_v26 }
 0x75a   :  { %v1177_v39 = vpop.f32.mrf.mxu2 }
 0x75b   :  { %v1178_v10 = vadd.f32 %v1177_v39, %v1156_v41 }
 0x75d   :  { %v1180_v27 = vmax.f32 %v1178_v10, 0.0 }
 0x75f   :  { %1337 = vmatmul.msk.f32.vlgmr.msrb.gmra.mxu2 %vm97_vm0, %v1180_v27 }
 0x7e2   :  { %v1202_v40 = vpop.f32.mrf.mxu2 }
 0x7e3   :  { %v1203_v34 = vadd.f32 %v1339_v35, %v1202_v40 }
 0x7e5   :  { %1205 = vst [vmem:[#allocation2] sm:$0xff] %v1203_v34 }
 0x7e6   :  { %1216 = dma.vmem_to_hbm [thread:$0]  %s1212_s19, 128, %s1214_s21, [#allocation3]  }
 0x7e7   :  { %1431 = dma.done.wait [#allocation3], 128  }
 0x7e8   :  { %1432 = vsyncadd [#allocation3], 4294967168 }
 0x7e9   :  { %1221 = vsyncpa [#allocation3], 1 }

</bundles_post_ra>
